<compile_context>
chip_gen: v6e
topology: v6e:2x2x1
jax: 0.10.0
libtpu: 0.0.40
codegen_flags: <defaults>
</compile_context>

<pallas_src>
import functools

import jax
import jax.numpy as jnp
from jax import lax
from jax.experimental import pallas as pl
from jax.experimental.pallas import tpu as pltpu


# ----------------------------- Pallas kernel ------------------------------
def rcab_kernel(x_ref, w1_ref, b1_ref, w2_ref, b2_ref,
                g1_ref, cb1_ref, g2_ref, cb2_ref,
                o_ref, *, NB, H, W, C, compute_dtype):
    WC = W * C
    M = NB * H                                      # stacked-image row count
    cdt = compute_dtype

    x2d = x_ref[...]                                # (M, WC) f32, lane-dense

    # Per-row edge masks for SAME zero-padding in H.  Because NB images are
    # stacked along M, the same masks also zero the halo at image boundaries.
    # Tiny (M, 1) VPU work (replaces the old (H,H) shift-matrix matmuls).
    row = lax.broadcasted_iota(jnp.int32, (M, 1), 0)
    rin = row % H
    mask_top = (rin != 0).astype(jnp.float32)       # row i-1 exists in image
    mask_bot = (rin != H - 1).astype(jnp.float32)   # row i+1 exists in image

    def conv3x3(a, w_ref, b_ref):
        # 3x3 SAME conv: W-taps + W-padding are folded into the packed
        # (WC, WC) dy-blocks; the H halo is two XLU sublane rolls + masks.
        # Three independent MXU pushes accumulate in place (MRB on v7x).
        prev = (pltpu.roll(a, shift=1, axis=0) * mask_top).astype(cdt)      # a[i-1]
        nxt = (pltpu.roll(a, shift=M - 1, axis=0) * mask_bot).astype(cdt)   # a[i+1]
        acc = jnp.dot(prev, w_ref[0], preferred_element_type=jnp.float32)
        acc = acc + jnp.dot(a.astype(cdt), w_ref[1],
                            preferred_element_type=jnp.float32)
        acc = acc + jnp.dot(nxt, w_ref[2],
                            preferred_element_type=jnp.float32)
        return acc + b_ref[...]

    # ---- conv1 + ReLU, conv2 (post-matmul math stays f32 on the VPU) ----
    h1 = jnp.maximum(conv3x3(x2d, w1_ref, b1_ref), 0.0)        # (M, WC)
    a2 = conv3x3(h1, w2_ref, b2_ref)                           # (M, WC)

    # ---- channel attention ----
    # Per-image avg-pool is fused into g1 (scaled, W-tiled squeeze weight);
    # excite weight/bias are pre-broadcast to WC lanes -> lane-dense scale.
    a2_im = a2.reshape(NB, H, WC)
    colsum = jnp.sum(a2_im, axis=1)                            # (NB, WC)
    y = jnp.maximum(
        jnp.dot(colsum.astype(cdt), g1_ref[...],
                preferred_element_type=jnp.float32) + cb1_ref[...], 0.0)
    scale = jax.nn.sigmoid(
        jnp.dot(y.astype(cdt), g2_ref[...],
                preferred_element_type=jnp.float32) + cb2_ref[...])  # (NB, WC)

    # ---- CA scale + residual add, single unmasked lane-dense store ----
    res = (a2_im * scale[:, None, :]).reshape(M, WC)
    o_ref[...] = (res + x2d).astype(o_ref.dtype)


# ------------------------- wrapper-side weight packing ----------------------
def pack_conv_weight(w_tap, W, dtype):
    """Pack (9, C, C) tap-major conv weights into (3, W*C, W*C) dy-blocks:
    block[dy] maps the lane-flattened row at height i+dy-1 to output row i,
    with the W-direction taps and SAME W-padding folded in."""
    C = w_tap.shape[1]
    WC = W * C
    w = w_tap.reshape(3, 3, C, C)                     # [dy, dx, ci, co]
    jp = jnp.arange(W)[:, None]                       # input width index
    j = jnp.arange(W)[None, :]                        # output width index
    dx = jp - j + 1                                   # (W, W)
    valid = ((dx >= 0) & (dx < 3)).astype(w_tap.dtype)
    dxc = jnp.clip(dx, 0, 2)
    blocks = w[:, dxc] * valid[None, :, :, None, None]   # (3, W, W, C, C)
    return blocks.transpose(0, 1, 3, 2, 4).reshape(3, WC, WC).astype(dtype)


# ------------------------------- forward ------------------------------------
def rcab_forward_flat(x_flat, params, *, H, W, C, batch_block=None,
                      compute_dtype=jnp.bfloat16):
    """x_flat: (N, H, W*C) lane-dense (NHWC-flattened) f32 activations.

    batch_block: images fused per grid step (stacked along the matmul M dim).
    Default = N (whole batch in one step; best on single-TC chips).  For v7x
    megacore, pass N // 2 so each TensorCore gets one grid step.
    """
    w1, b1, w2, b2, cw1, cb1, cw2, cb2 = params
    N = x_flat.shape[0]
    WC = W * C
    Cr = cw1.shape[1]
    Crp = -(-Cr // 128) * 128                       # pad squeeze dim to 128 lanes
    NB = N if batch_block is None else batch_block
    assert N % NB == 0, "batch_block must divide N"
    M = NB * H                                      # rows per grid step

    # Pack conv weights into dy-blocks (bf16 MXU operands), biases stay f32.
    w1c = pack_conv_weight(w1, W, compute_dtype)    # (3, WC, WC)
    w2c = pack_conv_weight(w2, W, compute_dtype)
    b1f = jnp.tile(b1, (1, W)).astype(jnp.float32)  # (1, WC)
    b2f = jnp.tile(b2, (1, W)).astype(jnp.float32)
    # CA: fuse avg-pool (1/(H*W)) into squeeze weight; pre-broadcast excite.
    g1 = jnp.pad(jnp.tile(cw1 / (H * W), (W, 1)),
                 ((0, 0), (0, Crp - Cr))).astype(compute_dtype)   # (WC, Crp)
    cb1p = jnp.pad(cb1, ((0, 0), (0, Crp - Cr))).astype(jnp.float32)
    g2 = jnp.pad(jnp.tile(cw2, (1, W)),
                 ((0, Crp - Cr), (0, 0))).astype(compute_dtype)   # (Crp, WC)
    cb2f = jnp.tile(cb2, (1, W)).astype(jnp.float32)

    x2d = x_flat.reshape(N * H, WC)                 # rows-stacked, lane-dense

    # Right-sized VMEM budget: double-buffered activation I/O blocks,
    # weights (counted double-buffered in case Buffered(1) is unavailable),
    # plus headroom for temporaries / compiler scratch.
    # NOTE(v7x): re-derive against 64 MiB/TC when scaling C or W; at realistic
    # sizes prefer output lane widths that are multiples of 256 (v6e/v7x MXU).
    cbytes = jnp.dtype(compute_dtype).itemsize
    act_block = M * WC * 4
    weight_bytes = (2 * 3 * WC * WC + WC * Crp + Crp * WC) * cbytes
    bias_bytes = (3 * WC + Crp) * 4
    vmem_limit = int(2 * (2 * act_block) + 2 * (weight_bytes + bias_bytes)
                     + (4 << 20))

    def _weight_spec(shape, single_buffer):
        ndim = len(shape)
        if single_buffer:
            # Constant-index weights: no point double-buffering them.
            return pl.BlockSpec(shape, lambda n, _nd=ndim: (0,) * _nd,
                                pipeline_mode=pl.Buffered(1))
        return pl.BlockSpec(shape, lambda n, _nd=ndim: (0,) * _nd)

    def _build(single_buffer_weights):
        in_specs = [
            pl.BlockSpec((M, WC), lambda n: (n, 0)),                 # x rows
            _weight_spec((3, WC, WC), single_buffer_weights),        # conv1 dy-blocks
            _weight_spec((1, WC), single_buffer_weights),            # conv1 bias
            _weight_spec((3, WC, WC), single_buffer_weights),        # conv2 dy-blocks
            _weight_spec((1, WC), single_buffer_weights),            # conv2 bias
            _weight_spec((WC, Crp), single_buffer_weights),          # CA squeeze (pool-fused)
            _weight_spec((1, Crp), single_buffer_weights),           # CA squeeze bias
            _weight_spec((Crp, WC), single_buffer_weights),          # CA excite (lane-bcast)
            _weight_spec((1, WC), single_buffer_weights),            # CA excite bias
        ]
        return pl.pallas_call(
            functools.partial(rcab_kernel, NB=NB, H=H, W=W, C=C,
                              compute_dtype=compute_dtype),
            out_shape=jax.ShapeDtypeStruct((N * H, WC), jnp.float32),
            grid_spec=pltpu.PrefetchScalarGridSpec(
                num_scalar_prefetch=0,
                grid=(N // NB,),
                in_specs=in_specs,
                out_specs=pl.BlockSpec((M, WC), lambda n: (n, 0)),
            ),
            compiler_params=pltpu.CompilerParams(
                dimension_semantics=("parallel",),
                vmem_limit_bytes=vmem_limit,
            ),
        )

    args = (x2d, w1c, b1f, w2c, b2f, g1, cb1p, g2, cb2f)
    try:
        out2d = _build(True)(*args)
    except Exception:
        # pipeline_mode=pl.Buffered(1) unsupported in this build: fall back to
        # default double-buffering (costs only a few hundred KiB at this size).
        out2d = _build(False)(*args)
    return out2d.reshape(N, H, WC)


def rcab_forward(x_nchw, params, **kw):
    """PyTorch-interface wrapper: x_nchw (N, C, H, W) f32 -> (N, C, H, W).

    NOTE: in a full network keep activations in the lane-dense (N, H, W*C)
    layout across blocks (call rcab_forward_flat directly, ideally chaining
    several RCABs in one pallas_call); the transposes here exist only to
    match the NCHW module interface for the standalone test.
    """
    N, C, H, W = x_nchw.shape
    x_flat = jnp.transpose(x_nchw, (0, 2, 3, 1)).reshape(N, H, W * C)
    out_flat = rcab_forward_flat(x_flat, params, H=H, W=W, C=C, **kw)
    return jnp.transpose(out_flat.reshape(N, H, W, C), (0, 3, 1, 2))


# ------------------------- pure-JAX reference -------------------------------
def rcab_reference(x_nchw, params):
    w1, b1, w2, b2, cw1, cb1, cw2, cb2 = params
    C = x_nchw.shape[1]
    x = jnp.transpose(x_nchw, (0, 2, 3, 1))        # NHWC

    def conv3(h, w_tap, b):
        w_hwio = w_tap.reshape(3, 3, C, C)          # tap-major -> HWIO
        out = lax.conv_general_dilated(
            h, w_hwio, window_strides=(1, 1), padding="SAME",
            dimension_numbers=("NHWC", "HWIO", "NHWC"))
        return out + b.reshape(1, 1, 1, C)

    h = jnp.maximum(conv3(x, w1, b1), 0.0)
    h = conv3(h, w2, b2)
    pooled = jnp.mean(h, axis=(1, 2), keepdims=True)          # (N,1,1,C)
    y = jnp.maximum(jnp.einsum("nijc,cd->nijd", pooled, cw1) + cb1, 0.0)
    y = jax.nn.sigmoid(jnp.einsum("nijd,dc->nijc", y, cw2) + cb2)
    res = h * y
    out = res + x
    return jnp.transpose(out, (0, 3, 1, 2))


# --------------------------------- main -------------------------------------
if __name__ == "__main__":
    # Small config: n_feat=8, kernel_size=3, reduction=4, batch=2, 16x16.
    # W*C = 128 keeps every load/store/op lane-dense and unmasked.
    N, C, H, W = 2, 8, 16, 16
    reduction = 4
    Cr = C // reduction

    key = jax.random.PRNGKey(0)
    keys = jax.random.split(key, 9)

    scale = 0.1
    w1 = scale * jax.random.normal(keys[0], (9, C, C), jnp.float32)
    b1 = scale * jax.random.normal(keys[1], (1, C), jnp.float32)
    w2 = scale * jax.random.normal(keys[2], (9, C, C), jnp.float32)
    b2 = scale * jax.random.normal(keys[3], (1, C), jnp.float32)
    cw1 = scale * jax.random.normal(keys[4], (C, Cr), jnp.float32)
    cb1 = scale * jax.random.normal(keys[5], (1, Cr), jnp.float32)
    cw2 = scale * jax.random.normal(keys[6], (Cr, C), jnp.float32)
    cb2 = scale * jax.random.normal(keys[7], (1, C), jnp.float32)
    params = (w1, b1, w2, b2, cw1, cb1, cw2, cb2)

    x = jax.random.normal(keys[8], (N, C, H, W), jnp.float32)

    out = rcab_forward(x, params)          # default: whole batch in one step
    out = jax.block_until_ready(out)

    ref = jax.block_until_ready(rcab_reference(x, params))
    assert out.shape == (N, C, H, W)
    # bf16 MXU operands (f32 accumulation / f32 VPU math) -> ~1e-2 worst-case
    # absolute deviation from the pure-f32 reference at these magnitudes.
    assert jnp.allclose(out, ref, rtol=3e-2, atol=3e-2), (
        float(jnp.max(jnp.abs(out - ref))))

    print("KERNEL_OK")
</pallas_src>

<mosaic_0001>
module attributes {stable_mosaic.version = 11 : i64} {
  func.func @rcab_kernel(%arg0: i32, %arg1: memref<32x128xf32, #tpu.memory_space<vmem>>, %arg2: memref<3x128x128xbf16, #tpu.memory_space<vmem>>, %arg3: memref<1x128xf32, #tpu.memory_space<vmem>>, %arg4: memref<3x128x128xbf16, #tpu.memory_space<vmem>>, %arg5: memref<1x128xf32, #tpu.memory_space<vmem>>, %arg6: memref<128x128xbf16, #tpu.memory_space<vmem>>, %arg7: memref<1x128xf32, #tpu.memory_space<vmem>>, %arg8: memref<128x128xbf16, #tpu.memory_space<vmem>>, %arg9: memref<1x128xf32, #tpu.memory_space<vmem>>, %arg10: memref<32x128xf32, #tpu.memory_space<vmem>>) attributes {dimension_semantics = [#tpu.dimension_semantics<parallel>], iteration_bounds = array<i64: 1>, scalar_prefetch = 0 : i64, scratch_operands = 0 : i64, tpu.core_type = #tpu.core_type<tc>, window_params = [{transform_indices = @transform_0, window_bounds = array<i64: 32, 128>}, {pipeline_mode = #tpu.pipeline_mode<synchronous>, transform_indices = @transform_1, window_bounds = array<i64: 3, 128, 128>}, {pipeline_mode = #tpu.pipeline_mode<synchronous>, transform_indices = @transform_2, window_bounds = array<i64: 1, 128>}, {pipeline_mode = #tpu.pipeline_mode<synchronous>, transform_indices = @transform_3, window_bounds = array<i64: 3, 128, 128>}, {pipeline_mode = #tpu.pipeline_mode<synchronous>, transform_indices = @transform_4, window_bounds = array<i64: 1, 128>}, {pipeline_mode = #tpu.pipeline_mode<synchronous>, transform_indices = @transform_5, window_bounds = array<i64: 128, 128>}, {pipeline_mode = #tpu.pipeline_mode<synchronous>, transform_indices = @transform_6, window_bounds = array<i64: 1, 128>}, {pipeline_mode = #tpu.pipeline_mode<synchronous>, transform_indices = @transform_7, window_bounds = array<i64: 128, 128>}, {pipeline_mode = #tpu.pipeline_mode<synchronous>, transform_indices = @transform_8, window_bounds = array<i64: 1, 128>}, {transform_indices = @transform_9, window_bounds = array<i64: 32, 128>}]} {
    %c0 = arith.constant 0 : index
    %c0_0 = arith.constant 0 : index
    %0 = vector.load %arg1[%c0, %c0_0] : memref<32x128xf32, #tpu.memory_space<vmem>>, vector<32x128xf32>
    %1 = tpu.iota {dimensions = array<i32: 0>} : vector<32x1xi32>
    %c16_i32 = arith.constant 16 : i32
    %c0_i32 = arith.constant 0 : i32
    %2 = arith.cmpi eq, %c16_i32, %c0_i32 : i32
    %c1_i32 = arith.constant 1 : i32
    %3 = arith.select %2, %c1_i32, %c16_i32 : i32
    %4 = vector.broadcast %3 : i32 to vector<32x1xi32>
    %5 = arith.remsi %1, %4 : vector<32x1xi32>
    %c0_i32_1 = arith.constant 0 : i32
    %6 = vector.broadcast %c0_i32_1 : i32 to vector<32x1xi32>
    %7 = arith.cmpi ne, %5, %6 : vector<32x1xi32>
    %c0_i32_2 = arith.constant 0 : i32
    %8 = vector.broadcast %c0_i32_2 : i32 to vector<32x1xi32>
    %9 = arith.cmpi slt, %5, %8 : vector<32x1xi32>
    %c0_i32_3 = arith.constant 0 : i32
    %10 = arith.cmpi slt, %3, %c0_i32_3 : i32
    %11 = vector.broadcast %10 : i1 to vector<32x1xi1>
    %12 = vector.broadcast %11 : vector<32x1xi1> to vector<32x1xi1>
    %13 = arith.xori %9, %12 : vector<32x1xi1>
    %14 = arith.andi %13, %7 : vector<32x1xi1>
    %15 = vector.broadcast %3 : i32 to vector<32x1xi32>
    %16 = arith.addi %5, %15 : vector<32x1xi32>
    %17 = arith.select %14, %16, %5 : vector<32x1xi1>, vector<32x1xi32>
    %c0_i32_4 = arith.constant 0 : i32
    %18 = vector.broadcast %c0_i32_4 : i32 to vector<32x1xi32>
    %19 = arith.cmpi ne, %17, %18 : vector<32x1xi32>
    %20 = arith.extui %19 : vector<32x1xi1> to vector<32x1xi32>
    %21 = arith.sitofp %20 : vector<32x1xi32> to vector<32x1xf32>
    %c15_i32 = arith.constant 15 : i32
    %22 = vector.broadcast %c15_i32 : i32 to vector<32x1xi32>
    %23 = arith.cmpi ne, %17, %22 : vector<32x1xi32>
    %24 = arith.extui %23 : vector<32x1xi1> to vector<32x1xi32>
    %25 = arith.sitofp %24 : vector<32x1xi32> to vector<32x1xf32>
    %c1_i32_5 = arith.constant 1 : i32
    %26 = tpu.dynamic_rotate %0 by %c1_i32_5 dim 0 : vector<32x128xf32>, i32 -> vector<32x128xf32>
    %27 = vector.broadcast %21 : vector<32x1xf32> to vector<32x128xf32>
    %28 = arith.mulf %26, %27 : vector<32x128xf32>
    %29 = arith.truncf %28 : vector<32x128xf32> to vector<32x128xbf16>
    %c31_i32 = arith.constant 31 : i32
    %30 = tpu.dynamic_rotate %0 by %c31_i32 dim 0 : vector<32x128xf32>, i32 -> vector<32x128xf32>
    %31 = vector.broadcast %25 : vector<32x1xf32> to vector<32x128xf32>
    %32 = arith.mulf %30, %31 : vector<32x128xf32>
    %33 = arith.truncf %32 : vector<32x128xf32> to vector<32x128xbf16>
    %c0_6 = arith.constant 0 : index
    %c0_7 = arith.constant 0 : index
    %c0_8 = arith.constant 0 : index
    %34 = vector.load %arg2[%c0_6, %c0_7, %c0_8] : memref<3x128x128xbf16, #tpu.memory_space<vmem>>, vector<1x128x128xbf16>
    %35 = vector.shape_cast %34 : vector<1x128x128xbf16> to vector<128x128xbf16>
    %cst = arith.constant dense<0.000000e+00> : vector<32x128xf32>
    %36 = tpu.matmul %29, %35, %cst {dimension_numbers = #tpu.dot_dimension_numbers<[1], [0], [0], [1], [0, 0, 1, 1], [], []>} : vector<32x128xbf16>, vector<128x128xbf16>, vector<32x128xf32> -> vector<32x128xf32>
    %37 = arith.truncf %0 : vector<32x128xf32> to vector<32x128xbf16>
    %c1 = arith.constant 1 : index
    %c0_9 = arith.constant 0 : index
    %c0_10 = arith.constant 0 : index
    %38 = vector.load %arg2[%c1, %c0_9, %c0_10] : memref<3x128x128xbf16, #tpu.memory_space<vmem>>, vector<1x128x128xbf16>
    %39 = vector.shape_cast %38 : vector<1x128x128xbf16> to vector<128x128xbf16>
    %cst_11 = arith.constant dense<0.000000e+00> : vector<32x128xf32>
    %40 = tpu.matmul %37, %39, %cst_11 {dimension_numbers = #tpu.dot_dimension_numbers<[1], [0], [0], [1], [0, 0, 1, 1], [], []>} : vector<32x128xbf16>, vector<128x128xbf16>, vector<32x128xf32> -> vector<32x128xf32>
    %41 = arith.addf %36, %40 : vector<32x128xf32>
    %c2 = arith.constant 2 : index
    %c0_12 = arith.constant 0 : index
    %c0_13 = arith.constant 0 : index
    %42 = vector.load %arg2[%c2, %c0_12, %c0_13] : memref<3x128x128xbf16, #tpu.memory_space<vmem>>, vector<1x128x128xbf16>
    %43 = vector.shape_cast %42 : vector<1x128x128xbf16> to vector<128x128xbf16>
    %cst_14 = arith.constant dense<0.000000e+00> : vector<32x128xf32>
    %44 = tpu.matmul %33, %43, %cst_14 {dimension_numbers = #tpu.dot_dimension_numbers<[1], [0], [0], [1], [0, 0, 1, 1], [], []>} : vector<32x128xbf16>, vector<128x128xbf16>, vector<32x128xf32> -> vector<32x128xf32>
    %45 = arith.addf %41, %44 : vector<32x128xf32>
    %c0_15 = arith.constant 0 : index
    %c0_16 = arith.constant 0 : index
    %46 = vector.load %arg3[%c0_15, %c0_16] : memref<1x128xf32, #tpu.memory_space<vmem>>, vector<1x128xf32>
    %47 = vector.broadcast %46 : vector<1x128xf32> to vector<32x128xf32>
    %48 = arith.addf %45, %47 : vector<32x128xf32>
    %cst_17 = arith.constant 0.000000e+00 : f32
    %49 = vector.broadcast %cst_17 : f32 to vector<32x128xf32>
    %50 = arith.maximumf %48, %49 : vector<32x128xf32>
    %c1_i32_18 = arith.constant 1 : i32
    %51 = tpu.dynamic_rotate %50 by %c1_i32_18 dim 0 : vector<32x128xf32>, i32 -> vector<32x128xf32>
    %52 = vector.broadcast %21 : vector<32x1xf32> to vector<32x128xf32>
    %53 = arith.mulf %51, %52 : vector<32x128xf32>
    %54 = arith.truncf %53 : vector<32x128xf32> to vector<32x128xbf16>
    %c31_i32_19 = arith.constant 31 : i32
    %55 = tpu.dynamic_rotate %50 by %c31_i32_19 dim 0 : vector<32x128xf32>, i32 -> vector<32x128xf32>
    %56 = vector.broadcast %25 : vector<32x1xf32> to vector<32x128xf32>
    %57 = arith.mulf %55, %56 : vector<32x128xf32>
    %58 = arith.truncf %57 : vector<32x128xf32> to vector<32x128xbf16>
    %c0_20 = arith.constant 0 : index
    %c0_21 = arith.constant 0 : index
    %c0_22 = arith.constant 0 : index
    %59 = vector.load %arg4[%c0_20, %c0_21, %c0_22] : memref<3x128x128xbf16, #tpu.memory_space<vmem>>, vector<1x128x128xbf16>
    %60 = vector.shape_cast %59 : vector<1x128x128xbf16> to vector<128x128xbf16>
    %cst_23 = arith.constant dense<0.000000e+00> : vector<32x128xf32>
    %61 = tpu.matmul %54, %60, %cst_23 {dimension_numbers = #tpu.dot_dimension_numbers<[1], [0], [0], [1], [0, 0, 1, 1], [], []>} : vector<32x128xbf16>, vector<128x128xbf16>, vector<32x128xf32> -> vector<32x128xf32>
    %62 = arith.truncf %50 : vector<32x128xf32> to vector<32x128xbf16>
    %c1_24 = arith.constant 1 : index
    %c0_25 = arith.constant 0 : index
    %c0_26 = arith.constant 0 : index
    %63 = vector.load %arg4[%c1_24, %c0_25, %c0_26] : memref<3x128x128xbf16, #tpu.memory_space<vmem>>, vector<1x128x128xbf16>
    %64 = vector.shape_cast %63 : vector<1x128x128xbf16> to vector<128x128xbf16>
    %cst_27 = arith.constant dense<0.000000e+00> : vector<32x128xf32>
    %65 = tpu.matmul %62, %64, %cst_27 {dimension_numbers = #tpu.dot_dimension_numbers<[1], [0], [0], [1], [0, 0, 1, 1], [], []>} : vector<32x128xbf16>, vector<128x128xbf16>, vector<32x128xf32> -> vector<32x128xf32>
    %66 = arith.addf %61, %65 : vector<32x128xf32>
    %c2_28 = arith.constant 2 : index
    %c0_29 = arith.constant 0 : index
    %c0_30 = arith.constant 0 : index
    %67 = vector.load %arg4[%c2_28, %c0_29, %c0_30] : memref<3x128x128xbf16, #tpu.memory_space<vmem>>, vector<1x128x128xbf16>
    %68 = vector.shape_cast %67 : vector<1x128x128xbf16> to vector<128x128xbf16>
    %cst_31 = arith.constant dense<0.000000e+00> : vector<32x128xf32>
    %69 = tpu.matmul %58, %68, %cst_31 {dimension_numbers = #tpu.dot_dimension_numbers<[1], [0], [0], [1], [0, 0, 1, 1], [], []>} : vector<32x128xbf16>, vector<128x128xbf16>, vector<32x128xf32> -> vector<32x128xf32>
    %70 = arith.addf %66, %69 : vector<32x128xf32>
    %c0_32 = arith.constant 0 : index
    %c0_33 = arith.constant 0 : index
    %71 = vector.load %arg5[%c0_32, %c0_33] : memref<1x128xf32, #tpu.memory_space<vmem>>, vector<1x128xf32>
    %72 = vector.broadcast %71 : vector<1x128xf32> to vector<32x128xf32>
    %73 = arith.addf %70, %72 : vector<32x128xf32>
    %74 = vector.shape_cast %73 : vector<32x128xf32> to vector<2x16x128xf32>
    %cst_34 = arith.constant dense<0.000000e+00> : vector<2x128xf32>
    %75 = vector.multi_reduction <add>, %74, %cst_34 [1] : vector<2x16x128xf32> to vector<2x128xf32>
    %76 = arith.truncf %75 : vector<2x128xf32> to vector<2x128xbf16>
    %c0_35 = arith.constant 0 : index
    %c0_36 = arith.constant 0 : index
    %77 = vector.load %arg6[%c0_35, %c0_36] : memref<128x128xbf16, #tpu.memory_space<vmem>>, vector<128x128xbf16>
    %cst_37 = arith.constant dense<0.000000e+00> : vector<2x128xf32>
    %78 = tpu.matmul %76, %77, %cst_37 {dimension_numbers = #tpu.dot_dimension_numbers<[1], [0], [0], [1], [0, 0, 1, 1], [], []>} : vector<2x128xbf16>, vector<128x128xbf16>, vector<2x128xf32> -> vector<2x128xf32>
    %c0_38 = arith.constant 0 : index
    %c0_39 = arith.constant 0 : index
    %79 = vector.load %arg7[%c0_38, %c0_39] : memref<1x128xf32, #tpu.memory_space<vmem>>, vector<1x128xf32>
    %80 = vector.broadcast %79 : vector<1x128xf32> to vector<2x128xf32>
    %81 = arith.addf %78, %80 : vector<2x128xf32>
    %cst_40 = arith.constant 0.000000e+00 : f32
    %82 = vector.broadcast %cst_40 : f32 to vector<2x128xf32>
    %83 = arith.maximumf %81, %82 : vector<2x128xf32>
    %84 = arith.truncf %83 : vector<2x128xf32> to vector<2x128xbf16>
    %c0_41 = arith.constant 0 : index
    %c0_42 = arith.constant 0 : index
    %85 = vector.load %arg8[%c0_41, %c0_42] : memref<128x128xbf16, #tpu.memory_space<vmem>>, vector<128x128xbf16>
    %cst_43 = arith.constant dense<0.000000e+00> : vector<2x128xf32>
    %86 = tpu.matmul %84, %85, %cst_43 {dimension_numbers = #tpu.dot_dimension_numbers<[1], [0], [0], [1], [0, 0, 1, 1], [], []>} : vector<2x128xbf16>, vector<128x128xbf16>, vector<2x128xf32> -> vector<2x128xf32>
    %c0_44 = arith.constant 0 : index
    %c0_45 = arith.constant 0 : index
    %87 = vector.load %arg9[%c0_44, %c0_45] : memref<1x128xf32, #tpu.memory_space<vmem>>, vector<1x128xf32>
    %88 = vector.broadcast %87 : vector<1x128xf32> to vector<2x128xf32>
    %89 = arith.addf %86, %88 : vector<2x128xf32>
    %90 = arith.negf %89 : vector<2x128xf32>
    %91 = math.exp %90 : vector<2x128xf32>
    %cst_46 = arith.constant 1.000000e+00 : f32
    %92 = vector.broadcast %cst_46 : f32 to vector<2x128xf32>
    %93 = arith.addf %92, %91 : vector<2x128xf32>
    %94 = arith.divf %92, %93 : vector<2x128xf32>
    %95 = vector.shape_cast %94 : vector<2x128xf32> to vector<2x1x128xf32>
    %96 = vector.broadcast %95 : vector<2x1x128xf32> to vector<2x16x128xf32>
    %97 = arith.mulf %74, %96 : vector<2x16x128xf32>
    %98 = vector.shape_cast %97 : vector<2x16x128xf32> to vector<32x128xf32>
    %99 = arith.addf %98, %0 : vector<32x128xf32>
    %c0_47 = arith.constant 0 : index
    %c0_48 = arith.constant 0 : index
    %100 = vector.load %arg10[%c0_47, %c0_48] : memref<32x128xf32, #tpu.memory_space<vmem>>, vector<32x128xf32>
    tpu.vector_store %arg10[%c0_47, %c0_48], %99 {strides = array<i32>} : memref<32x128xf32, #tpu.memory_space<vmem>>, vector<32x128xf32>,
    return
  }
  func.func @transform_0(%arg0: i32) -> (i32, i32) {
    %c0_i32 = arith.constant 0 : i32
    %c0_i32_0 = arith.constant 0 : i32
    return %arg0, %c0_i32 : i32, i32
  }
  func.func @transform_1(%arg0: i32) -> (i32, i32, i32) {
    %c0_i32 = arith.constant 0 : i32
    %c0_i32_0 = arith.constant 0 : i32
    %c0_i32_1 = arith.constant 0 : i32
    %c0_i32_2 = arith.constant 0 : i32
    return %c0_i32, %c0_i32_0, %c0_i32_1 : i32, i32, i32
  }
  func.func @transform_2(%arg0: i32) -> (i32, i32) {
    %c0_i32 = arith.constant 0 : i32
    %c0_i32_0 = arith.constant 0 : i32
    %c0_i32_1 = arith.constant 0 : i32
    return %c0_i32, %c0_i32_0 : i32, i32
  }
  func.func @transform_3(%arg0: i32) -> (i32, i32, i32) {
    %c0_i32 = arith.constant 0 : i32
    %c0_i32_0 = arith.constant 0 : i32
    %c0_i32_1 = arith.constant 0 : i32
    %c0_i32_2 = arith.constant 0 : i32
    return %c0_i32, %c0_i32_0, %c0_i32_1 : i32, i32, i32
  }
  func.func @transform_4(%arg0: i32) -> (i32, i32) {
    %c0_i32 = arith.constant 0 : i32
    %c0_i32_0 = arith.constant 0 : i32
    %c0_i32_1 = arith.constant 0 : i32
    return %c0_i32, %c0_i32_0 : i32, i32
  }
  func.func @transform_5(%arg0: i32) -> (i32, i32) {
    %c0_i32 = arith.constant 0 : i32
    %c0_i32_0 = arith.constant 0 : i32
    %c0_i32_1 = arith.constant 0 : i32
    return %c0_i32, %c0_i32_0 : i32, i32
  }
  func.func @transform_6(%arg0: i32) -> (i32, i32) {
    %c0_i32 = arith.constant 0 : i32
    %c0_i32_0 = arith.constant 0 : i32
    %c0_i32_1 = arith.constant 0 : i32
    return %c0_i32, %c0_i32_0 : i32, i32
  }
  func.func @transform_7(%arg0: i32) -> (i32, i32) {
    %c0_i32 = arith.constant 0 : i32
    %c0_i32_0 = arith.constant 0 : i32
    %c0_i32_1 = arith.constant 0 : i32
    return %c0_i32, %c0_i32_0 : i32, i32
  }
  func.func @transform_8(%arg0: i32) -> (i32, i32) {
    %c0_i32 = arith.constant 0 : i32
    %c0_i32_0 = arith.constant 0 : i32
    %c0_i32_1 = arith.constant 0 : i32
    return %c0_i32, %c0_i32_0 : i32, i32
  }
  func.func @transform_9(%arg0: i32) -> (i32, i32) {
    %c0_i32 = arith.constant 0 : i32
    %c0_i32_0 = arith.constant 0 : i32
    return %arg0, %c0_i32 : i32, i32
  }
}

module attributes {stable_mosaic.version = 11 : i64} {
  func.func @rcab_kernel(%arg0: i32, %arg1: memref<32x128xf32, #tpu.memory_space<vmem>>, %arg2: memref<3x128x128xbf16, #tpu.memory_space<vmem>>, %arg3: memref<1x128xf32, #tpu.memory_space<vmem>>, %arg4: memref<3x128x128xbf16, #tpu.memory_space<vmem>>, %arg5: memref<1x128xf32, #tpu.memory_space<vmem>>, %arg6: memref<128x128xbf16, #tpu.memory_space<vmem>>, %arg7: memref<1x128xf32, #tpu.memory_space<vmem>>, %arg8: memref<128x128xbf16, #tpu.memory_space<vmem>>, %arg9: memref<1x128xf32, #tpu.memory_space<vmem>>, %arg10: memref<32x128xf32, #tpu.memory_space<vmem>>) attributes {dimension_semantics = [#tpu.dimension_semantics<parallel>], iteration_bounds = array<i64: 1>, scalar_prefetch = 0 : i64, scratch_operands = 0 : i64, tpu.core_type = #tpu.core_type<tc>, window_params = [{transform_indices = @transform_0, window_bounds = array<i64: 32, 128>}, {pipeline_mode = #tpu.pipeline_mode<synchronous>, transform_indices = @transform_1, window_bounds = array<i64: 3, 128, 128>}, {pipeline_mode = #tpu.pipeline_mode<synchronous>, transform_indices = @transform_2, window_bounds = array<i64: 1, 128>}, {pipeline_mode = #tpu.pipeline_mode<synchronous>, transform_indices = @transform_3, window_bounds = array<i64: 3, 128, 128>}, {pipeline_mode = #tpu.pipeline_mode<synchronous>, transform_indices = @transform_4, window_bounds = array<i64: 1, 128>}, {pipeline_mode = #tpu.pipeline_mode<synchronous>, transform_indices = @transform_5, window_bounds = array<i64: 128, 128>}, {pipeline_mode = #tpu.pipeline_mode<synchronous>, transform_indices = @transform_6, window_bounds = array<i64: 1, 128>}, {pipeline_mode = #tpu.pipeline_mode<synchronous>, transform_indices = @transform_7, window_bounds = array<i64: 128, 128>}, {pipeline_mode = #tpu.pipeline_mode<synchronous>, transform_indices = @transform_8, window_bounds = array<i64: 1, 128>}, {transform_indices = @transform_9, window_bounds = array<i64: 32, 128>}]} {
    %c0 = arith.constant 0 : index
    %c0_0 = arith.constant 0 : index
    %0 = vector.load %arg1[%c0, %c0_0] : memref<32x128xf32, #tpu.memory_space<vmem>>, vector<32x128xf32>
    %1 = tpu.iota {dimensions = array<i32: 0>} : vector<32x1xi32>
    %c16_i32 = arith.constant 16 : i32
    %c0_i32 = arith.constant 0 : i32
    %2 = arith.cmpi eq, %c16_i32, %c0_i32 : i32
    %c1_i32 = arith.constant 1 : i32
    %3 = arith.select %2, %c1_i32, %c16_i32 : i32
    %4 = vector.broadcast %3 : i32 to vector<32x1xi32>
    %5 = arith.remsi %1, %4 : vector<32x1xi32>
    %c0_i32_1 = arith.constant 0 : i32
    %6 = vector.broadcast %c0_i32_1 : i32 to vector<32x1xi32>
    %7 = arith.cmpi ne, %5, %6 : vector<32x1xi32>
    %c0_i32_2 = arith.constant 0 : i32
    %8 = vector.broadcast %c0_i32_2 : i32 to vector<32x1xi32>
    %9 = arith.cmpi slt, %5, %8 : vector<32x1xi32>
    %c0_i32_3 = arith.constant 0 : i32
    %10 = arith.cmpi slt, %3, %c0_i32_3 : i32
    %11 = vector.broadcast %10 : i1 to vector<32x1xi1>
    %12 = vector.broadcast %11 : vector<32x1xi1> to vector<32x1xi1>
    %13 = arith.xori %9, %12 : vector<32x1xi1>
    %14 = arith.andi %13, %7 : vector<32x1xi1>
    %15 = vector.broadcast %3 : i32 to vector<32x1xi32>
    %16 = arith.addi %5, %15 : vector<32x1xi32>
    %17 = arith.select %14, %16, %5 : vector<32x1xi1>, vector<32x1xi32>
    %c0_i32_4 = arith.constant 0 : i32
    %18 = vector.broadcast %c0_i32_4 : i32 to vector<32x1xi32>
    %19 = arith.cmpi ne, %17, %18 : vector<32x1xi32>
    %20 = arith.extui %19 : vector<32x1xi1> to vector<32x1xi32>
    %21 = arith.sitofp %20 : vector<32x1xi32> to vector<32x1xf32>
    %c15_i32 = arith.constant 15 : i32
    %22 = vector.broadcast %c15_i32 : i32 to vector<32x1xi32>
    %23 = arith.cmpi ne, %17, %22 : vector<32x1xi32>
    %24 = arith.extui %23 : vector<32x1xi1> to vector<32x1xi32>
    %25 = arith.sitofp %24 : vector<32x1xi32> to vector<32x1xf32>
    %c1_i32_5 = arith.constant 1 : i32
    %26 = tpu.dynamic_rotate %0 by %c1_i32_5 dim 0 : vector<32x128xf32>, i32 -> vector<32x128xf32>
    %27 = vector.broadcast %21 : vector<32x1xf32> to vector<32x128xf32>
    %28 = arith.mulf %26, %27 : vector<32x128xf32>
    %29 = arith.truncf %28 : vector<32x128xf32> to vector<32x128xbf16>
    %c31_i32 = arith.constant 31 : i32
    %30 = tpu.dynamic_rotate %0 by %c31_i32 dim 0 : vector<32x128xf32>, i32 -> vector<32x128xf32>
    %31 = vector.broadcast %25 : vector<32x1xf32> to vector<32x128xf32>
    %32 = arith.mulf %30, %31 : vector<32x128xf32>
    %33 = arith.truncf %32 : vector<32x128xf32> to vector<32x128xbf16>
    %c0_6 = arith.constant 0 : index
    %c0_7 = arith.constant 0 : index
    %c0_8 = arith.constant 0 : index
    %34 = vector.load %arg2[%c0_6, %c0_7, %c0_8] : memref<3x128x128xbf16, #tpu.memory_space<vmem>>, vector<1x128x128xbf16>
    %35 = vector.shape_cast %34 : vector<1x128x128xbf16> to vector<128x128xbf16>
    %cst = arith.constant dense<0.000000e+00> : vector<32x128xf32>
    %36 = tpu.matmul %29, %35, %cst {dimension_numbers = #tpu.dot_dimension_numbers<[1], [0], [0], [1], [0, 0, 1, 1], [], []>} : vector<32x128xbf16>, vector<128x128xbf16>, vector<32x128xf32> -> vector<32x128xf32>
    %37 = arith.truncf %0 : vector<32x128xf32> to vector<32x128xbf16>
    %c1 = arith.constant 1 : index
    %c0_9 = arith.constant 0 : index
    %c0_10 = arith.constant 0 : index
    %38 = vector.load %arg2[%c1, %c0_9, %c0_10] : memref<3x128x128xbf16, #tpu.memory_space<vmem>>, vector<1x128x128xbf16>
    %39 = vector.shape_cast %38 : vector<1x128x128xbf16> to vector<128x128xbf16>
    %cst_11 = arith.constant dense<0.000000e+00> : vector<32x128xf32>
    %40 = tpu.matmul %37, %39, %cst_11 {dimension_numbers = #tpu.dot_dimension_numbers<[1], [0], [0], [1], [0, 0, 1, 1], [], []>} : vector<32x128xbf16>, vector<128x128xbf16>, vector<32x128xf32> -> vector<32x128xf32>
    %41 = arith.addf %36, %40 : vector<32x128xf32>
    %c2 = arith.constant 2 : index
    %c0_12 = arith.constant 0 : index
    %c0_13 = arith.constant 0 : index
    %42 = vector.load %arg2[%c2, %c0_12, %c0_13] : memref<3x128x128xbf16, #tpu.memory_space<vmem>>, vector<1x128x128xbf16>
    %43 = vector.shape_cast %42 : vector<1x128x128xbf16> to vector<128x128xbf16>
    %cst_14 = arith.constant dense<0.000000e+00> : vector<32x128xf32>
    %44 = tpu.matmul %33, %43, %cst_14 {dimension_numbers = #tpu.dot_dimension_numbers<[1], [0], [0], [1], [0, 0, 1, 1], [], []>} : vector<32x128xbf16>, vector<128x128xbf16>, vector<32x128xf32> -> vector<32x128xf32>
    %45 = arith.addf %41, %44 : vector<32x128xf32>
    %c0_15 = arith.constant 0 : index
    %c0_16 = arith.constant 0 : index
    %46 = vector.load %arg3[%c0_15, %c0_16] : memref<1x128xf32, #tpu.memory_space<vmem>>, vector<1x128xf32>
    %47 = vector.broadcast %46 : vector<1x128xf32> to vector<32x128xf32>
    %48 = arith.addf %45, %47 : vector<32x128xf32>
    %cst_17 = arith.constant 0.000000e+00 : f32
    %49 = vector.broadcast %cst_17 : f32 to vector<32x128xf32>
    %50 = arith.maximumf %48, %49 : vector<32x128xf32>
    %c1_i32_18 = arith.constant 1 : i32
    %51 = tpu.dynamic_rotate %50 by %c1_i32_18 dim 0 : vector<32x128xf32>, i32 -> vector<32x128xf32>
    %52 = vector.broadcast %21 : vector<32x1xf32> to vector<32x128xf32>
    %53 = arith.mulf %51, %52 : vector<32x128xf32>
    %54 = arith.truncf %53 : vector<32x128xf32> to vector<32x128xbf16>
    %c31_i32_19 = arith.constant 31 : i32
    %55 = tpu.dynamic_rotate %50 by %c31_i32_19 dim 0 : vector<32x128xf32>, i32 -> vector<32x128xf32>
    %56 = vector.broadcast %25 : vector<32x1xf32> to vector<32x128xf32>
    %57 = arith.mulf %55, %56 : vector<32x128xf32>
    %58 = arith.truncf %57 : vector<32x128xf32> to vector<32x128xbf16>
    %c0_20 = arith.constant 0 : index
    %c0_21 = arith.constant 0 : index
    %c0_22 = arith.constant 0 : index
    %59 = vector.load %arg4[%c0_20, %c0_21, %c0_22] : memref<3x128x128xbf16, #tpu.memory_space<vmem>>, vector<1x128x128xbf16>
    %60 = vector.shape_cast %59 : vector<1x128x128xbf16> to vector<128x128xbf16>
    %cst_23 = arith.constant dense<0.000000e+00> : vector<32x128xf32>
    %61 = tpu.matmul %54, %60, %cst_23 {dimension_numbers = #tpu.dot_dimension_numbers<[1], [0], [0], [1], [0, 0, 1, 1], [], []>} : vector<32x128xbf16>, vector<128x128xbf16>, vector<32x128xf32> -> vector<32x128xf32>
    %62 = arith.truncf %50 : vector<32x128xf32> to vector<32x128xbf16>
    %c1_24 = arith.constant 1 : index
    %c0_25 = arith.constant 0 : index
    %c0_26 = arith.constant 0 : index
    %63 = vector.load %arg4[%c1_24, %c0_25, %c0_26] : memref<3x128x128xbf16, #tpu.memory_space<vmem>>, vector<1x128x128xbf16>
    %64 = vector.shape_cast %63 : vector<1x128x128xbf16> to vector<128x128xbf16>
    %cst_27 = arith.constant dense<0.000000e+00> : vector<32x128xf32>
    %65 = tpu.matmul %62, %64, %cst_27 {dimension_numbers = #tpu.dot_dimension_numbers<[1], [0], [0], [1], [0, 0, 1, 1], [], []>} : vector<32x128xbf16>, vector<128x128xbf16>, vector<32x128xf32> -> vector<32x128xf32>
    %66 = arith.addf %61, %65 : vector<32x128xf32>
    %c2_28 = arith.constant 2 : index
    %c0_29 = arith.constant 0 : index
    %c0_30 = arith.constant 0 : index
    %67 = vector.load %arg4[%c2_28, %c0_29, %c0_30] : memref<3x128x128xbf16, #tpu.memory_space<vmem>>, vector<1x128x128xbf16>
    %68 = vector.shape_cast %67 : vector<1x128x128xbf16> to vector<128x128xbf16>
    %cst_31 = arith.constant dense<0.000000e+00> : vector<32x128xf32>
    %69 = tpu.matmul %58, %68, %cst_31 {dimension_numbers = #tpu.dot_dimension_numbers<[1], [0], [0], [1], [0, 0, 1, 1], [], []>} : vector<32x128xbf16>, vector<128x128xbf16>, vector<32x128xf32> -> vector<32x128xf32>
    %70 = arith.addf %66, %69 : vector<32x128xf32>
    %c0_32 = arith.constant 0 : index
    %c0_33 = arith.constant 0 : index
    %71 = vector.load %arg5[%c0_32, %c0_33] : memref<1x128xf32, #tpu.memory_space<vmem>>, vector<1x128xf32>
    %72 = vector.broadcast %71 : vector<1x128xf32> to vector<32x128xf32>
    %73 = arith.addf %70, %72 : vector<32x128xf32>
    %74 = vector.shape_cast %73 : vector<32x128xf32> to vector<2x16x128xf32>
    %cst_34 = arith.constant dense<0.000000e+00> : vector<2x128xf32>
    %75 = vector.multi_reduction <add>, %74, %cst_34 [1] : vector<2x16x128xf32> to vector<2x128xf32>
    %76 = arith.truncf %75 : vector<2x128xf32> to vector<2x128xbf16>
    %c0_35 = arith.constant 0 : index
    %c0_36 = arith.constant 0 : index
    %77 = vector.load %arg6[%c0_35, %c0_36] : memref<128x128xbf16, #tpu.memory_space<vmem>>, vector<128x128xbf16>
    %cst_37 = arith.constant dense<0.000000e+00> : vector<2x128xf32>
    %78 = tpu.matmul %76, %77, %cst_37 {dimension_numbers = #tpu.dot_dimension_numbers<[1], [0], [0], [1], [0, 0, 1, 1], [], []>} : vector<2x128xbf16>, vector<128x128xbf16>, vector<2x128xf32> -> vector<2x128xf32>
    %c0_38 = arith.constant 0 : index
    %c0_39 = arith.constant 0 : index
    %79 = vector.load %arg7[%c0_38, %c0_39] : memref<1x128xf32, #tpu.memory_space<vmem>>, vector<1x128xf32>
    %80 = vector.broadcast %79 : vector<1x128xf32> to vector<2x128xf32>
    %81 = arith.addf %78, %80 : vector<2x128xf32>
    %cst_40 = arith.constant 0.000000e+00 : f32
    %82 = vector.broadcast %cst_40 : f32 to vector<2x128xf32>
    %83 = arith.maximumf %81, %82 : vector<2x128xf32>
    %84 = arith.truncf %83 : vector<2x128xf32> to vector<2x128xbf16>
    %c0_41 = arith.constant 0 : index
    %c0_42 = arith.constant 0 : index
    %85 = vector.load %arg8[%c0_41, %c0_42] : memref<128x128xbf16, #tpu.memory_space<vmem>>, vector<128x128xbf16>
    %cst_43 = arith.constant dense<0.000000e+00> : vector<2x128xf32>
    %86 = tpu.matmul %84, %85, %cst_43 {dimension_numbers = #tpu.dot_dimension_numbers<[1], [0], [0], [1], [0, 0, 1, 1], [], []>} : vector<2x128xbf16>, vector<128x128xbf16>, vector<2x128xf32> -> vector<2x128xf32>
    %c0_44 = arith.constant 0 : index
    %c0_45 = arith.constant 0 : index
    %87 = vector.load %arg9[%c0_44, %c0_45] : memref<1x128xf32, #tpu.memory_space<vmem>>, vector<1x128xf32>
    %88 = vector.broadcast %87 : vector<1x128xf32> to vector<2x128xf32>
    %89 = arith.addf %86, %88 : vector<2x128xf32>
    %90 = arith.negf %89 : vector<2x128xf32>
    %91 = math.exp %90 : vector<2x128xf32>
    %cst_46 = arith.constant 1.000000e+00 : f32
    %92 = vector.broadcast %cst_46 : f32 to vector<2x128xf32>
    %93 = arith.addf %92, %91 : vector<2x128xf32>
    %94 = arith.divf %92, %93 : vector<2x128xf32>
    %95 = vector.shape_cast %94 : vector<2x128xf32> to vector<2x1x128xf32>
    %96 = vector.broadcast %95 : vector<2x1x128xf32> to vector<2x16x128xf32>
    %97 = arith.mulf %74, %96 : vector<2x16x128xf32>
    %98 = vector.shape_cast %97 : vector<2x16x128xf32> to vector<32x128xf32>
    %99 = arith.addf %98, %0 : vector<32x128xf32>
    %c0_47 = arith.constant 0 : index
    %c0_48 = arith.constant 0 : index
    %100 = vector.load %arg10[%c0_47, %c0_48] : memref<32x128xf32, #tpu.memory_space<vmem>>, vector<32x128xf32>
    tpu.vector_store %arg10[%c0_47, %c0_48], %99 {strides = array<i32>} : memref<32x128xf32, #tpu.memory_space<vmem>>, vector<32x128xf32>,
    return
  }
  func.func @transform_0(%arg0: i32) -> (i32, i32) {
    %c0_i32 = arith.constant 0 : i32
    %c0_i32_0 = arith.constant 0 : i32
    return %arg0, %c0_i32 : i32, i32
  }
  func.func @transform_1(%arg0: i32) -> (i32, i32, i32) {
    %c0_i32 = arith.constant 0 : i32
    %c0_i32_0 = arith.constant 0 : i32
    %c0_i32_1 = arith.constant 0 : i32
    %c0_i32_2 = arith.constant 0 : i32
    return %c0_i32, %c0_i32_0, %c0_i32_1 : i32, i32, i32
  }
  func.func @transform_2(%arg0: i32) -> (i32, i32) {
    %c0_i32 = arith.constant 0 : i32
    %c0_i32_0 = arith.constant 0 : i32
    %c0_i32_1 = arith.constant 0 : i32
    return %c0_i32, %c0_i32_0 : i32, i32
  }
  func.func @transform_3(%arg0: i32) -> (i32, i32, i32) {
    %c0_i32 = arith.constant 0 : i32
    %c0_i32_0 = arith.constant 0 : i32
    %c0_i32_1 = arith.constant 0 : i32
    %c0_i32_2 = arith.constant 0 : i32
    return %c0_i32, %c0_i32_0, %c0_i32_1 : i32, i32, i32
  }
  func.func @transform_4(%arg0: i32) -> (i32, i32) {
    %c0_i32 = arith.constant 0 : i32
    %c0_i32_0 = arith.constant 0 : i32
    %c0_i32_1 = arith.constant 0 : i32
    return %c0_i32, %c0_i32_0 : i32, i32
  }
  func.func @transform_5(%arg0: i32) -> (i32, i32) {
    %c0_i32 = arith.constant 0 : i32
    %c0_i32_0 = arith.constant 0 : i32
    %c0_i32_1 = arith.constant 0 : i32
    return %c0_i32, %c0_i32_0 : i32, i32
  }
  func.func @transform_6(%arg0: i32) -> (i32, i32) {
    %c0_i32 = arith.constant 0 : i32
    %c0_i32_0 = arith.constant 0 : i32
    %c0_i32_1 = arith.constant 0 : i32
    return %c0_i32, %c0_i32_0 : i32, i32
  }
  func.func @transform_7(%arg0: i32) -> (i32, i32) {
    %c0_i32 = arith.constant 0 : i32
    %c0_i32_0 = arith.constant 0 : i32
    %c0_i32_1 = arith.constant 0 : i32
    return %c0_i32, %c0_i32_0 : i32, i32
  }
  func.func @transform_8(%arg0: i32) -> (i32, i32) {
    %c0_i32 = arith.constant 0 : i32
    %c0_i32_0 = arith.constant 0 : i32
    %c0_i32_1 = arith.constant 0 : i32
    return %c0_i32, %c0_i32_0 : i32, i32
  }
  func.func @transform_9(%arg0: i32) -> (i32, i32) {
    %c0_i32 = arith.constant 0 : i32
    %c0_i32_0 = arith.constant 0 : i32
    return %arg0, %c0_i32 : i32, i32
  }
}

</mosaic_0001>

<bundles_post_ra>
// kernel: tpu_custom_call.1
= control target key start
LH: loop header
LB: loop body
LE: loop exit
PB: predicated region body
PF: predicated region fallthrough
CT: control target
= control target key end

     0   :  { %14 = vsyncpa [#allocation3], 0  ;;  %s2037_s0 = inlined_call_operand.hbm [shape: f32[32,128], index: 0, kind: input, shape index: {}]   ;;  %s2038_s1 = inlined_call_operand.hbm [shape: bf16[3,128,128], index: 1, kind: input, shape index: {}]   ;;  %s2039_s2 = inlined_call_operand.vmem [shape: f32[1,128], index: 2, kind: input, shape index: {}]   ;;  %s2040_s3 = inlined_call_operand.hbm [shape: bf16[3,128,128], index: 3, kind: input, shape index: {}]   ;;  %s2041_s4 = inlined_call_operand.vmem [shape: f32[1,128], index: 4, kind: input, shape index: {}]   ;;  %s2042_s5 = inlined_call_operand.hbm [shape: bf16[128,128], index: 5, kind: input, shape index: {}]   ;;  %s2043_s6 = inlined_call_operand.vmem [shape: f32[1,128], index: 6, kind: input, shape index: {}]   ;;  %s2044_s7 = inlined_call_operand.hbm [shape: bf16[128,128], index: 7, kind: input, shape index: {}]   ;;  %s2045_s8 = inlined_call_operand.vmem [shape: f32[1,128], index: 8, kind: input, shape index: {}]   ;;  %s2046_s9 = inlined_call_operand.hbm [shape: f32[32,128], index: 9, kind: output, shape index: {}]  }
   0x1   :  { %15 = vsyncpa [#allocation6], 0 }
   0x2   :  { %16 = vsyncpa [#allocation9], 0 }
   0x3   :  { %17 = vsyncpa [#allocation4], 0  ;;  %s1799_s30 = smov [#allocation5]  }
   0x4   :  { %s35_s10 = sshll.u32 %s1799_s30, 4  ;;  %s36_s10 = int_to_ptr.vmem [resolvable:$true] %s35_s10 }
   0x5   :  { %s1679_s11 = scalar_lea.vmem %s36_s10, 3072  ;;  %p1684_p1 = scmp.lt.s32.totalorder %s36_s10, %s36_s10 }
   0x6   :  { %p1680_p0 = scmp.ne.s32.totalorder %s36_s10, %s1679_s11  ;;  %p1685_p2 = scmp.lt.s32.totalorder %s1679_s11, %s1679_s11 }
   0x8   :  { %p1686_p3 = por %p1685_p2, %p1684_p1 }
   0xa   :  { %p1687_p4 = pnand %p1686_p3, %p1680_p0 }
   0xc   :  { %1690 = shalt.err (!%p1687_p4)
}
   0xd   :  { %s1800_s12 = smov 64   ;;  %s1801_s13 = smov 4  }
   0xe   :  { %41 = dma.hbm_to_vmem [thread:$0]  %s2038_s1, 3072, %s36_s10, [#allocation6], %s1800_s12, %s1800_s12, %s1801_s13  }
   0xf   :  { %s1802_s16 = smov [#allocation8]   ;;  %s1803_s18 = smov [#allocation2]  }
  0x10   :  { %s63_s17 = sshll.u32 %s1802_s16, 4  ;;  %s23_s19 = sshll.u32 %s1803_s18, 4  ;;  %s64_s17 = int_to_ptr.vmem [resolvable:$true] %s63_s17  ;;  %s24_s19 = int_to_ptr.vmem [resolvable:$true] %s23_s19 }
  0x11   :  { %s1699_s20 = scalar_lea.vmem %s64_s17, 1024  ;;  %p1704_p6 = scmp.lt.s32.totalorder %s64_s17, %s64_s17 }
  0x12   :  { %p1700_p5 = scmp.ne.s32.totalorder %s64_s17, %s1699_s20  ;;  %p1705_p7 = scmp.lt.s32.totalorder %s1699_s20, %s1699_s20 }
  0x14   :  { %p1706_p8 = por %p1705_p7, %p1704_p6 }
  0x16   :  { %p1707_p9 = pnand %p1706_p8, %p1700_p5 }
  0x18   :  { %1710 = shalt.err (!%p1707_p9)
}
  0x19   :  { %69 = dma.hbm_to_vmem [thread:$0]  %s2042_s5, 1024, %s64_s17, [#allocation9], %s1800_s12, %s1800_s12, %s1801_s13  }
  0x1a   :  { %s1719_s1 = scalar_lea.vmem %s24_s19, 512  ;;  %p1724_p11 = scmp.lt.s32.totalorder %s24_s19, %s24_s19 }
  0x1b   :  { %p1720_p10 = scmp.ne.s32.totalorder %s24_s19, %s1719_s1  ;;  %p1725_p12 = scmp.lt.s32.totalorder %s1719_s1, %s1719_s1 }
  0x1d   :  { %p1726_p13 = por %p1725_p12, %p1724_p11 }
  0x1f   :  { %p1727_p0 = pnand %p1726_p13, %p1720_p10 }
  0x21   :  { %1730 = shalt.err (!%p1727_p0)
}
  0x22   :  { %s1804_s23 = smov 128   ;;  %s1805_s24 = smov 8  }
  0x23   :  { %29 = dma.hbm_to_vmem [thread:$0]  %s2037_s0, 512, %s24_s19, [#allocation3], %s1804_s23, %s1804_s23, %s1805_s24  }
  0x24   :  { %s1806_s27 = smov [#allocation7]   ;;  %s1807_s5 = smov [#allocation10]  }
  0x25   :  { %s49_s28 = sshll.u32 %s1806_s27, 4  ;;  %s77_s29 = sshll.u32 %s1807_s5, 4  ;;  %s50_s28 = int_to_ptr.vmem [resolvable:$true] %s49_s28  ;;  %s78_s29 = int_to_ptr.vmem [resolvable:$true] %s77_s29 }
  0x26   :  { %s1739_s30 = scalar_lea.vmem %s50_s28, 3072  ;;  %p1744_p2 = scmp.lt.s32.totalorder %s50_s28, %s50_s28 }
  0x27   :  { %p1740_p1 = scmp.ne.s32.totalorder %s50_s28, %s1739_s30  ;;  %p1745_p3 = scmp.lt.s32.totalorder %s1739_s30, %s1739_s30 }
  0x29   :  { %p1746_p4 = por %p1745_p3, %p1744_p2 }
  0x2b   :  { %p1747_p5 = pnand %p1746_p4, %p1740_p1 }
  0x2d   :  { %1750 = shalt.err (!%p1747_p5)
}
  0x2e   :  { %55 = dma.hbm_to_vmem [thread:$0]  %s2040_s3, 3072, %s50_s28, [#allocation6], %s1800_s12, %s1800_s12, %s1801_s13  }
  0x2f   :  { %s1759_s0 = scalar_lea.vmem %s78_s29, 1024  ;;  %p1764_p7 = scmp.lt.s32.totalorder %s78_s29, %s78_s29 }
  0x30   :  { %p1760_p6 = scmp.ne.s32.totalorder %s78_s29, %s1759_s0  ;;  %p1765_p8 = scmp.lt.s32.totalorder %s1759_s0, %s1759_s0 }
  0x32   :  { %p1766_p9 = por %p1765_p8, %p1764_p7 }
  0x34   :  { %p1767_p10 = pnand %p1766_p9, %p1760_p6 }
  0x36   :  { %1770 = shalt.err (!%p1767_p10)
}
  0x37   :  { %83 = dma.hbm_to_vmem [thread:$0]  %s2044_s7, 1024, %s78_s29, [#allocation9], %s1800_s12, %s1800_s12, %s1801_s13  }
  0x38   :  { %1791 = dma.done.wait [#allocation3], 512  }
  0x39   :  { %1792 = vsyncadd [#allocation3], 4294966784 }
  0x3a   :  { %1793 = dma.done.wait [#allocation6], 6144  }
  0x3b   :  { %1794 = vsyncadd [#allocation6], 4294961152 }
  0x3c   :  { %1795 = dma.done.wait [#allocation9], 2048  }
  0x3d   :  { %1796 = vsyncadd [#allocation9], 4294965248  ;;  %v1603_v0 = vld [vmem:[#allocation5 + $0x78] sm:$0xff]   ;;  %v1605_v2 = vld [vmem:[#allocation5 + $0x70] sm:$0xff]   ;;  %v106_v3 = vlaneseq  ;;  %v1808_v27 = vmov 0.0   ;;  %vm1809_vm6 = vmmov 0  }
  0x3e   :  { %v1604_v1 = vld [vmem:[#allocation5 + $0x38] sm:$0xff]   ;;  %1430 = vmatprep.subr.bf16.mxu0 %v1603_v0  ;;  %v1606_v4 = vld [vmem:[#allocation5 + $0x30] sm:$0xff]   ;;  %v1607_v5 = vld [vmem:[#allocation5 + $0x68] sm:$0xff]   ;;  %vm1004_vm7 = vcmask 1041409  }
  0x3f   :  { %1450 = vmatprep.subr.bf16.mxu1 %v1604_v1  ;;  %1431 = vmatpush3.bf16.msra.mxu0 %v1603_v0  ;;  %v1608_v6 = vld [vmem:[#allocation5 + $0x28] sm:$0xff]   ;;  %v1892_v7 = vshrl.u32 %v106_v3, 7  ;;  %v1609_v8 = vld [vmem:[#allocation5 + $0x60] sm:$0xff]   ;;  %v1611_v13 = vld [vmem:[#allocation5 + $0x58] sm:$0xff]  }
  0x40   :  { %1451 = vmatpush3.bf16.msra.mxu1 %v1604_v1  ;;  %1432 = vmatprep.subr.bf16.mxu0 %v1605_v2  ;;  %v1610_v9 = vld [vmem:[#allocation5 + $0x20] sm:$0xff]   ;;  %v1612_v14 = vld [vmem:[#allocation5 + $0x18] sm:$0xff]   ;;  %v1613_v17 = vld [vmem:[#allocation5 + $0x50] sm:$0xff]  }
  0x41   :  { %1452 = vmatprep.subr.bf16.mxu1 %v1606_v4  ;;  %v115_v10 = vand.u32 15, %v1892_v7  ;;  %v109_v11 = vadd.s32 16, %v1892_v7  ;;  %v108_v12 = vadd.s32 8, %v1892_v7  ;;  %v1901_v19 = vld [vmem:[#allocation2] sm:$0xff]  ;;  %v1903_v20 = vld [vmem:[#allocation2 + $0x8] sm:$0xff]  ;;  %v1905_v21 = vld [vmem:[#allocation2 + $0x18] sm:$0xff] }
  0x42   :  { %vm187_vm1 = vcmp.lt.s32.totalorder %v1892_v7, 1  ;;  %v1614_v22 = vld [vmem:[#allocation5 + $0x10] sm:$0xff]   ;;  %v229_v23 = vpack.c.bf16 %v1903_v20, %v1901_v19  ;;  %v183_v24 = vrot.slane %v1901_v19, 7  ;;  %v1914_v26 = vadd.s32 24, %v1892_v7  ;;  %v1615_v31 = vld [vmem:[#allocation5 + $0x48] sm:$0xff]   ;;  %v1617_v41 = vld [vmem:[#allocation5 + $0x40] sm:$0xff]  }
  0x43   :  { %1433 = vmatpush3.bf16.msra.mxu0 %v1605_v2  ;;  %vm1897_vm0 = vcmp.ne.s32.totalorder %v115_v10, 0  ;;  %v129_v16 = vand.u32 15, %v109_v11  ;;  %v122_v18 = vand.u32 15, %v108_v12  ;;  %v1911_v25 = vld [vmem:[#allocation2 + $0x10] sm:$0xff]  ;;  %v184_v29 = vrot.slane %v1903_v20, 7  ;;  %v1616_v33 = vld [vmem:[#allocation5 + $0x8] sm:$0xff]  }
  0x44   :  { %1453 = vmatpush3.bf16.msra.mxu1 %v1606_v4  ;;  %1434 = vmatprep.subr.bf16.mxu0 %v1607_v5  ;;  %v1919_v28 = vsel %vm1897_vm0, 1.0, %v1808_v27  ;;  %v186_v30 = vrot.slane %v1905_v21, 7  ;;  %v185_v36 = vrot.slane %v1911_v25, 7  ;;  %v199_v37 = vrot.slane %v1903_v20, 1  ;;  %v1618_v44 = vld [vmem:[#allocation5] sm:$0xff]   ;;  %v1619_v50 = vld [vmem:[#allocation5 + $0xb8] sm:$0xff]  }
  0x45   :  { %1454 = vmatprep.subr.bf16.mxu1 %v1608_v6  ;;  %vm161_vm2 = vcmp.ne.s32.totalorder %v129_v16, 0  ;;  %1446 = vmatprep.mubr.bf16.mxu0 %v229_v23  ;;  %vm1923_vm3 = vcmp.ne.s32.totalorder %v122_v18, 15  ;;  %v190_v34 = vsel %vm187_vm1, %v183_v24, %v184_v29  ;;  %v200_v39 = vrot.slane %v1911_v25, 1  ;;  %v1620_v56 = vld [vmem:[#allocation5 + $0xb0] sm:$0xff]   ;;  %v1621_v59 = vld [vmem:[#allocation5 + $0xa8] sm:$0xff]   ;;  %v1622_v60 = vld [vmem:[#allocation5 + $0xa0] sm:$0xff]  }
  0x46   :  { %v191_v35 = vsel %vm187_vm1, %v186_v30, %v183_v24  ;;  %v1936_v40 = vsel %vm161_vm2, 1.0, %v1808_v27  ;;  %vm202_vm4 = vcmp.lt.s32.totalorder %v1892_v7, 7  ;;  %v1942_v43 = vsel %vm1923_vm3, 1.0, %v1808_v27  ;;  %v1623_v61 = vld [vmem:[#allocation5 + $0x98] sm:$0xff]   ;;  %v1624_v62 = vld [vmem:[#allocation5 + $0x90] sm:$0xff]   ;;  %v1625_v63 = vld [vmem:[#allocation5 + $0x88] sm:$0xff]  }
  0x47   :  { %1435 = vmatpush3.bf16.msra.mxu0 %v1607_v5  ;;  %v192_v38 = vmul.f32 %v1919_v28, %v191_v35  ;;  %v189_v45 = vsel %vm187_vm1, %v184_v29, %v185_v36  ;;  %v136_v46 = vand.u32 15, %v1914_v26  ;;  %v198_v47 = vrot.slane %v1901_v19, 1  ;;  %v1626_v2 = vld [vmem:[#allocation5 + $0x80] sm:$0xff]   ;;  %v1631_v10 = vld [vmem:[#allocation7 + $0x30] sm:$0xff]   ;;  %v1630_v11 = vld [vmem:[#allocation7 + $0x68] sm:$0xff]  }
  0x48   :  { %1455 = vmatpush3.bf16.msra.mxu1 %v1608_v6  ;;  %1436 = vmatprep.subr.bf16.mxu0 %v1609_v8  ;;  %v204_v48 = vsel %vm202_vm4, %v199_v37, %v200_v39  ;;  %v201_v49 = vrot.slane %v1905_v21, 1  ;;  %v194_v51 = vmul.f32 %v1936_v40, %v189_v45  ;;  %v188_v52 = vsel %vm187_vm1, %v185_v36, %v186_v30  ;;  %v1627_v6 = vld [vmem:[#allocation7 + $0x78] sm:$0xff]   ;;  %v1633_v12 = vld [vmem:[#allocation7 + $0x28] sm:$0xff]   ;;  %v1635_v15 = vld [vmem:[#allocation7 + $0x20] sm:$0xff]  }
  0x49   :  { %1456 = vmatprep.subr.bf16.mxu1 %v1610_v9  ;;  %v196_v42 = vpack.c.bf16 %v190_v34, %v192_v38  ;;  %v208_v53 = vmul.f32 %v1942_v43, %v204_v48  ;;  %v205_v54 = vsel %vm202_vm4, %v198_v47, %v199_v37  ;;  %v230_v55 = vpack.c.bf16 %v1905_v21, %v1911_v25  ;;  %v1636_v16 = vld [vmem:[#allocation7 + $0x50] sm:$0xff]   ;;  %v1638_v18 = vld [vmem:[#allocation7 + $0x48] sm:$0xff]   ;;  %v1640_v23 = vld [vmem:[#allocation7 + $0x40] sm:$0xff]  }
  0x4a   :  { %v197_v57 = vpack.c.bf16 %v188_v52, %v194_v51  ;;  %vm174_vm5 = vcmp.ne.s32.totalorder %v136_v46, 15  ;;  %v206_v1 = vsel %vm202_vm4, %v201_v49, %v198_v47  ;;  %v203_v4 = vsel %vm202_vm4, %v200_v39, %v201_v49  ;;  %v1641_v24 = vld [vmem:[#allocation7 + $0x8] sm:$0xff]   ;;  %v1642_v26 = vld [vmem:[#allocation7 + $0xb8] sm:$0xff]   ;;  %v1643_v29 = vld [vmem:[#allocation7] sm:$0xff]  }
  0x4b   :  { %1437 = vmatpush3.bf16.msra.mxu0 %v1609_v8  ;;  %1466 = vmatprep.mubr.bf16.mxu1 %v196_v42  ;;  %v211_v58 = vpack.c.bf16 %v208_v53, %v205_v54  ;;  %v1960_v0 = vsel %vm174_vm5, 1.0, %v1808_v27  ;;  %v1628_v8 = vld [vmem:[#allocation7 + $0x70] sm:$0xff]   ;;  %v1307_v42 = vld [vmem:[%s2039_s2] ss:$0 sm:$0xff] }
  0x4c   :  { %1457 = vmatpush3.bf16.msra.mxu1 %v1610_v9  ;;  %1438 = vmatprep.subr.bf16.mxu0 %v1611_v13  ;;  %v210_v3 = vmul.f32 %v1960_v0, %v206_v1  ;;  %v1629_v9 = vld [vmem:[#allocation7 + $0x38] sm:$0xff]  }
  0x4d   :  { %1458 = vmatprep.subr.bf16.mxu1 %v1612_v14 }
  0x4e   :  { %v212_v5 = vpack.c.bf16 %v210_v3, %v203_v4 }
  0x4f   :  { %1439 = vmatpush3.bf16.msra.mxu0 %v1611_v13  ;;  %v1632_v13 = vld [vmem:[#allocation7 + $0x60] sm:$0xff]  }
  0x50   :  { %1459 = vmatpush3.bf16.msra.mxu1 %v1612_v14  ;;  %1440 = vmatprep.subr.bf16.mxu0 %v1613_v17  ;;  %v1634_v14 = vld [vmem:[#allocation7 + $0x58] sm:$0xff]  }
  0x51   :  { %1460 = vmatprep.subr.bf16.mxu1 %v1614_v22 }
  0x53   :  { %1441 = vmatpush3.bf16.msra.mxu0 %v1613_v17  ;;  %v1637_v17 = vld [vmem:[#allocation7 + $0x18] sm:$0xff]  }
  0x54   :  { %1461 = vmatpush3.bf16.msra.mxu1 %v1614_v22  ;;  %1442 = vmatprep.subr.bf16.mxu0 %v1615_v31  ;;  %v1639_v22 = vld [vmem:[#allocation7 + $0x10] sm:$0xff]  }
  0x55   :  { %1462 = vmatprep.subr.bf16.mxu1 %v1616_v33 }
  0x57   :  { %1443 = vmatpush3.bf16.msra.mxu0 %v1615_v31 }
  0x58   :  { %1463 = vmatpush3.bf16.msra.mxu1 %v1616_v33  ;;  %1444 = vmatprep.subr.bf16.mxu0 %v1617_v41 }
  0x59   :  { %1464 = vmatprep.subr.bf16.mxu1 %v1618_v44 }
  0x5b   :  { %1445 = vmatpush3.bf16.msra.mxu0 %v1617_v41 }
  0x5c   :  { %1465 = vmatpush3.bf16.msra.mxu1 %v1618_v44  ;;  %1470 = vmatprep.subr.bf16.mxu0 %v1619_v50 }
  0x5d   :  { %1490 = vmatprep.subr.bf16.mxu1 %v1627_v6 }
  0x5e   :  { %1447 = vmatmul.mubr.bf16.vlgmr.msra.gmra.mxu0 %v230_v55 }
  0x5f   :  { %1467 = vmatmul.mubr.bf16.vlgmr.msra.gmra.mxu1 %v197_v57  ;;  %1471 = vmatpush3.bf16.msra.mxu0 %v1619_v50 }
  0x60   :  { %1472 = vmatprep.subr.bf16.mxu0 %v1620_v56  ;;  %1486 = vmatprep.mubr.bf16.mxu0 %v211_v58 }
  0x61   :  { %1491 = vmatpush3.bf16.msra.mxu1 %v1627_v6 }
  0x62   :  { %1492 = vmatprep.subr.bf16.mxu1 %v1628_v8 }
  0x63   :  { %1473 = vmatpush3.bf16.msra.mxu0 %v1620_v56 }
  0x64   :  { %1474 = vmatprep.subr.bf16.mxu0 %v1621_v59 }
  0x65   :  { %1493 = vmatpush3.bf16.msra.mxu1 %v1628_v8 }
  0x66   :  { %1494 = vmatprep.subr.bf16.mxu1 %v1630_v11 }
  0x67   :  { %1475 = vmatpush3.bf16.msra.mxu0 %v1621_v59 }
  0x68   :  { %1476 = vmatprep.subr.bf16.mxu0 %v1622_v60 }
  0x69   :  { %1495 = vmatpush3.bf16.msra.mxu1 %v1630_v11 }
  0x6a   :  { %1496 = vmatprep.subr.bf16.mxu1 %v1632_v13 }
  0x6b   :  { %1477 = vmatpush3.bf16.msra.mxu0 %v1622_v60 }
  0x6c   :  { %1478 = vmatprep.subr.bf16.mxu0 %v1623_v61 }
  0x6d   :  { %1497 = vmatpush3.bf16.msra.mxu1 %v1632_v13 }
  0x6e   :  { %1498 = vmatprep.subr.bf16.mxu1 %v1634_v14 }
  0x6f   :  { %1479 = vmatpush3.bf16.msra.mxu0 %v1623_v61 }
  0x70   :  { %1480 = vmatprep.subr.bf16.mxu0 %v1624_v62 }
  0x71   :  { %1499 = vmatpush3.bf16.msra.mxu1 %v1634_v14 }
  0x72   :  { %1500 = vmatprep.subr.bf16.mxu1 %v1636_v16 }
  0x73   :  { %1481 = vmatpush3.bf16.msra.mxu0 %v1624_v62 }
  0x74   :  { %1482 = vmatprep.subr.bf16.mxu0 %v1625_v63 }
  0x75   :  { %1501 = vmatpush3.bf16.msra.mxu1 %v1636_v16 }
  0x76   :  { %1502 = vmatprep.subr.bf16.mxu1 %v1638_v18 }
  0x77   :  { %1483 = vmatpush3.bf16.msra.mxu0 %v1625_v63 }
  0x78   :  { %1484 = vmatprep.subr.bf16.mxu0 %v1626_v2 }
  0x79   :  { %1503 = vmatpush3.bf16.msra.mxu1 %v1638_v18 }
  0x7a   :  { %1504 = vmatprep.subr.bf16.mxu1 %v1640_v23 }
  0x7b   :  { %1485 = vmatpush3.bf16.msra.mxu0 %v1626_v2 }
  0x7c   :  { %1510 = vmatprep.subr.bf16.mxu0 %v1629_v9 }
  0x7d   :  { %1505 = vmatpush3.bf16.msra.mxu1 %v1640_v23  ;;  %v1645_v23 = vld [vmem:[#allocation7 + $0xa8] sm:$0xff]  }
  0x7e   :  { %1487 = vmatmul.mubr.bf16.vlgmr.msra.gmra.mxu0 %v212_v5  ;;  %1530 = vmatprep.subr.bf16.mxu1 %v1642_v26 }
  0x7f   :  { %1511 = vmatpush3.bf16.msra.mxu0 %v1629_v9  ;;  %v1644_v9 = vld [vmem:[#allocation7 + $0xb0] sm:$0xff]  }
  0x80   :  { %1512 = vmatprep.subr.bf16.mxu0 %v1631_v10 }
  0x83   :  { %1513 = vmatpush3.bf16.msra.mxu0 %v1631_v10 }
  0x84   :  { %1514 = vmatprep.subr.bf16.mxu0 %v1633_v12 }
  0x87   :  { %1515 = vmatpush3.bf16.msra.mxu0 %v1633_v12 }
  0x88   :  { %1516 = vmatprep.subr.bf16.mxu0 %v1635_v15 }
  0x8b   :  { %1517 = vmatpush3.bf16.msra.mxu0 %v1635_v15 }
  0x8c   :  { %1518 = vmatprep.subr.bf16.mxu0 %v1637_v17 }
  0x8f   :  { %1519 = vmatpush3.bf16.msra.mxu0 %v1637_v17 }
  0x90   :  { %1520 = vmatprep.subr.bf16.mxu0 %v1639_v22 }
  0x93   :  { %1521 = vmatpush3.bf16.msra.mxu0 %v1639_v22 }
  0x94   :  { %1522 = vmatprep.subr.bf16.mxu0 %v1641_v24 }
  0x97   :  { %1523 = vmatpush3.bf16.msra.mxu0 %v1641_v24  ;;  %v1646_v24 = vld [vmem:[#allocation7 + $0xa0] sm:$0xff]  }
  0x98   :  { %1524 = vmatprep.subr.bf16.mxu0 %v1643_v29 }
  0x9b   :  { %1525 = vmatpush3.bf16.msra.mxu0 %v1643_v29 }
  0x9c   :  { %1550 = vmatprep.subr.bf16.mxu0 %v1808_v27 }
 0x11e   :  { %v1448_v30 = vpop.f32.mrf.mxu0 }
 0x11f   :  { %v1468_v32 = vpop.f32.mrf.mxu1 }
 0x120   :  { %v330_v31 = vpop.f32.mrf.mxu0  ;;  %v436_v36 = vadd.f32 %v1468_v32, %v1448_v30  ;;  %v1650_v30 = vld [vmem:[#allocation7 + $0x80] sm:$0xff]  }
 0x121   :  { %v427_v34 = vpop.f32.mrf.mxu1 }
 0x122   :  { %v1449_v33 = vpop.f32.mrf.mxu0  ;;  %v428_v39 = vadd.f32 %v427_v34, %v330_v31 }
 0x123   :  { %v1469_v37 = vpop.f32.mrf.mxu1 }
 0x124   :  { %v333_v35 = vpop.f32.mrf.mxu0  ;;  %v439_v45 = vadd.f32 %v1469_v37, %v1449_v33  ;;  %v1653_v37 = vld [vmem:[#allocation8 + $0x28] sm:$0xff]  }
 0x125   :  { %v430_v46 = vpop.f32.mrf.mxu1 }
 0x126   :  { %v431_v52 = vadd.f32 %v430_v46, %v333_v35  ;;  %v1651_v35 = vld [vmem:[#allocation8 + $0x38] sm:$0xff]   ;;  %v1661_v46 = vld [vmem:[#allocation10 + $0x28] sm:$0xff]  }
 0x13e   :  { %v1488_v38 = vpop.f32.mrf.mxu0 }
 0x13f   :  { %v558_v41 = vadd.f32 %v1488_v38, %v436_v36  ;;  %v1652_v36 = vld [vmem:[#allocation8 + $0x30] sm:$0xff]   ;;  %v1655_v38 = vld [vmem:[#allocation8 + $0x18] sm:$0xff]  }
 0x140   :  { %v541_v44 = vpop.f32.mrf.mxu0 }
 0x141   :  { %v556_v47 = vadd.f32 %v541_v44, %v428_v39  ;;  %v569_v49 = vadd.f32 %v1307_v42, %v558_v41  ;;  %v1656_v39 = vld [vmem:[#allocation8 + $0x10] sm:$0xff]   ;;  %v1657_v41 = vld [vmem:[#allocation8 + $0x8] sm:$0xff]   ;;  %v1659_v44 = vld [vmem:[#allocation10 + $0x38] sm:$0xff]  }
 0x142   :  { %v1489_v48 = vpop.f32.mrf.mxu0 }
 0x143   :  { %v567_v50 = vadd.f32 %v1307_v42, %v556_v47  ;;  %v559_v51 = vadd.f32 %v1489_v48, %v439_v45  ;;  %v573_v57 = vmax.f32 %v569_v49, 0.0  ;;  %v1660_v45 = vld [vmem:[#allocation10 + $0x30] sm:$0xff]   ;;  %v1662_v47 = vld [vmem:[#allocation10 + $0x20] sm:$0xff]   ;;  %v1663_v48 = vld [vmem:[#allocation10 + $0x18] sm:$0xff]  }
 0x144   :  { %v544_v53 = vpop.f32.mrf.mxu0  ;;  %v1664_v49 = vld [vmem:[#allocation10 + $0x10] sm:$0xff]  }
 0x145   :  { %v571_v54 = vmax.f32 %v567_v50, 0.0  ;;  %v570_v55 = vadd.f32 %v1307_v42, %v559_v51  ;;  %v557_v56 = vadd.f32 %v544_v53, %v431_v52  ;;  %v577_v63 = vrot.slane %v573_v57, 7 }
 0x146   :  { %v591_v1 = vrot.slane %v573_v57, 1 }
 0x147   :  { %v574_v58 = vmax.f32 %v570_v55, 0.0  ;;  %v568_v59 = vadd.f32 %v1307_v42, %v557_v56  ;;  %v575_v60 = vrot.slane %v571_v54, 7  ;;  %v589_v10 = vrot.slane %v571_v54, 1  ;;  %v1658_v42 = vld [vmem:[#allocation8] sm:$0xff]  }
 0x149   :  { %v578_v61 = vrot.slane %v574_v58, 7  ;;  %v572_v62 = vmax.f32 %v568_v59, 0.0  ;;  %v620_v8 = vpack.c.bf16 %v574_v58, %v573_v57  ;;  %v592_v29 = vrot.slane %v574_v58, 1 }
 0x14b   :  { %v582_v2 = vsel %vm187_vm1, %v578_v61, %v575_v60  ;;  %v576_v3 = vrot.slane %v572_v62, 7  ;;  %v590_v4 = vrot.slane %v572_v62, 1  ;;  %v619_v5 = vpack.c.bf16 %v572_v62, %v571_v54 }
 0x14c   :  { %v583_v6 = vmul.f32 %v1919_v28, %v582_v2  ;;  %v579_v28 = vsel %vm187_vm1, %v577_v63, %v578_v61  ;;  %v596_v31 = vsel %vm202_vm4, %v592_v29, %v589_v10  ;;  %v593_v33 = vsel %vm202_vm4, %v591_v1, %v592_v29 }
 0x14d   :  { %1506 = vmatprep.mubr.bf16.mxu1 %v619_v5  ;;  %v581_v11 = vsel %vm187_vm1, %v575_v60, %v576_v3  ;;  %v580_v12 = vsel %vm187_vm1, %v576_v3, %v577_v63  ;;  %v594_v13 = vsel %vm202_vm4, %v590_v4, %v591_v1  ;;  %v595_v17 = vsel %vm202_vm4, %v589_v10, %v590_v4  ;;  %v1332_v1 = vld [vmem:[%s2041_s4] ss:$0 sm:$0xff] }
 0x14e   :  { %1507 = vmatmul.mubr.bf16.vlgmr.msra.gmra.mxu1 %v620_v8  ;;  %v587_v14 = vpack.c.bf16 %v581_v11, %v583_v6  ;;  %v585_v15 = vmul.f32 %v1936_v40, %v580_v12  ;;  %v598_v16 = vmul.f32 %v1942_v43, %v594_v13  ;;  %v1647_v40 = vld [vmem:[#allocation7 + $0x98] sm:$0xff]   ;;  %v1648_v43 = vld [vmem:[#allocation7 + $0x90] sm:$0xff]   ;;  %v600_v32 = vmul.f32 %v1960_v0, %v596_v31  ;;  %v1654_v0 = vld [vmem:[#allocation8 + $0x20] sm:$0xff]  }
 0x14f   :  { %1531 = vmatpush3.bf16.msra.mxu1 %v1642_v26  ;;  %v1649_v26 = vld [vmem:[#allocation7 + $0x88] sm:$0xff]  }
 0x150   :  { %1526 = vmatprep.mubr.bf16.mxu0 %v587_v14  ;;  %1532 = vmatprep.subr.bf16.mxu1 %v1644_v9  ;;  %v588_v18 = vpack.c.bf16 %v579_v28, %v585_v15  ;;  %v601_v22 = vpack.c.bf16 %v598_v16, %v595_v17  ;;  %v602_v34 = vpack.c.bf16 %v600_v32, %v593_v33 }
 0x152   :  { %1527 = vmatmul.mubr.bf16.vlgmr.msra.gmra.mxu0 %v588_v18  ;;  %1546 = vmatprep.mubr.bf16.mxu1 %v601_v22 }
 0x153   :  { %1533 = vmatpush3.bf16.msra.mxu1 %v1644_v9  ;;  %1551 = vmatpush3.bf16.msra.mxu0 %v1651_v35 }
 0x154   :  { %1534 = vmatprep.subr.bf16.mxu1 %v1645_v23  ;;  %1552 = vmatprep.subr.bf16.mxu0 %v1808_v27 }
 0x155   :  { %1566 = vmatprep.mubr.msk.bf16.mxu0 %vm1809_vm6, %v1808_v27 }
 0x157   :  { %1535 = vmatpush3.bf16.msra.mxu1 %v1645_v23  ;;  %1553 = vmatpush3.bf16.msra.mxu0 %v1652_v36  ;;  %v1665_v36 = vld [vmem:[#allocation10 + $0x8] sm:$0xff]  }
 0x158   :  { %1536 = vmatprep.subr.bf16.mxu1 %v1646_v24  ;;  %1554 = vmatprep.subr.bf16.mxu0 %v1808_v27 }
 0x15b   :  { %1537 = vmatpush3.bf16.msra.mxu1 %v1646_v24  ;;  %1555 = vmatpush3.bf16.msra.mxu0 %v1653_v37  ;;  %v1666_v37 = vld [vmem:[#allocation10] sm:$0xff]  }
 0x15c   :  { %1538 = vmatprep.subr.bf16.mxu1 %v1647_v40  ;;  %1556 = vmatprep.subr.bf16.mxu0 %v1808_v27 }
 0x15f   :  { %1539 = vmatpush3.bf16.msra.mxu1 %v1647_v40  ;;  %1557 = vmatpush3.bf16.msra.mxu0 %v1654_v0  ;;  %v1333_v0 = vld [vmem:[%s2043_s6] ss:$0 sm:$0xff]  ;;  %s1811_s6 = smov [#allocation11]  }
 0x160   :  { %1540 = vmatprep.subr.bf16.mxu1 %v1648_v43  ;;  %1558 = vmatprep.subr.bf16.mxu0 %v1808_v27 }
 0x163   :  { %1541 = vmatpush3.bf16.msra.mxu1 %v1648_v43  ;;  %1559 = vmatpush3.bf16.msra.mxu0 %v1655_v38 }
 0x164   :  { %1542 = vmatprep.subr.bf16.mxu1 %v1649_v26  ;;  %1560 = vmatprep.subr.bf16.mxu0 %v1808_v27 }
 0x167   :  { %1543 = vmatpush3.bf16.msra.mxu1 %v1649_v26  ;;  %1561 = vmatpush3.bf16.msra.mxu0 %v1656_v39 }
 0x168   :  { %1544 = vmatprep.subr.bf16.mxu1 %v1650_v30  ;;  %1562 = vmatprep.subr.bf16.mxu0 %v1808_v27 }
 0x16b   :  { %1545 = vmatpush3.bf16.msra.mxu1 %v1650_v30  ;;  %1563 = vmatpush3.bf16.msra.mxu0 %v1657_v41 }
 0x16c   :  { %1570 = vmatprep.subr.bf16.mxu1 %v1808_v27  ;;  %1564 = vmatprep.subr.bf16.mxu0 %v1808_v27 }
 0x16e   :  { %1547 = vmatmul.mubr.bf16.vlgmr.msra.gmra.mxu1 %v602_v34 }
 0x16f   :  { %1586 = vmatprep.mubr.msk.bf16.mxu1 %vm1809_vm6, %v1808_v27  ;;  %1565 = vmatpush3.bf16.msra.mxu0 %v1658_v42 }
 0x170   :  { %1571 = vmatpush3.bf16.msra.mxu1 %v1659_v44 }
 0x171   :  { %1572 = vmatprep.subr.bf16.mxu1 %v1808_v27 }
 0x174   :  { %1573 = vmatpush3.bf16.msra.mxu1 %v1660_v45 }
 0x175   :  { %1574 = vmatprep.subr.bf16.mxu1 %v1808_v27 }
 0x178   :  { %1575 = vmatpush3.bf16.msra.mxu1 %v1661_v46 }
 0x179   :  { %1576 = vmatprep.subr.bf16.mxu1 %v1808_v27 }
 0x17c   :  { %1577 = vmatpush3.bf16.msra.mxu1 %v1662_v47  ;;  %v1342_v47 = vld [vmem:[%s2045_s8] ss:$0 sm:$0xff]  ;;  %s1265_s8 = sshll.u32 %s1811_s6, 4  ;;  %s1266_s8 = int_to_ptr.vmem [resolvable:$true] %s1265_s8 }
 0x17d   :  { %1578 = vmatprep.subr.bf16.mxu1 %v1808_v27  ;;  %s1771_s18 = scalar_lea.vmem %s1266_s8, 512  ;;  %p1776_p12 = scmp.lt.s32.totalorder %s1266_s8, %s1266_s8 }
 0x17e   :  { %p1772_p11 = scmp.ne.s32.totalorder %s1266_s8, %s1771_s18  ;;  %p1777_p13 = scmp.lt.s32.totalorder %s1771_s18, %s1771_s18 }
 0x180   :  { %1579 = vmatpush3.bf16.msra.mxu1 %v1663_v48  ;;  %p1778_p0 = por %p1777_p13, %p1776_p12 }
 0x181   :  { %1580 = vmatprep.subr.bf16.mxu1 %v1808_v27 }
 0x182   :  { %p1779_p1 = pnand %p1778_p0, %p1772_p11 }
 0x184   :  { %1581 = vmatpush3.bf16.msra.mxu1 %v1664_v49 }
 0x185   :  { %1582 = vmatprep.subr.bf16.mxu1 %v1808_v27 }
 0x188   :  { %1583 = vmatpush3.bf16.msra.mxu1 %v1665_v36 }
 0x189   :  { %1584 = vmatprep.subr.bf16.mxu1 %v1808_v27 }
 0x18c   :  { %1585 = vmatpush3.bf16.msra.mxu1 %v1666_v37 }
 0x20e   :  { %v1508_v50 = vpop.f32.mrf.mxu1 }
 0x210   :  { %v720_v51 = vpop.f32.mrf.mxu1 }
 0x212   :  { %v1528_v52 = vpop.f32.mrf.mxu0  ;;  %v1509_v53 = vpop.f32.mrf.mxu1 }
 0x213   :  { %v826_v58 = vadd.f32 %v1528_v52, %v1508_v50 }
 0x214   :  { %v817_v54 = vpop.f32.mrf.mxu0  ;;  %v723_v55 = vpop.f32.mrf.mxu1 }
 0x215   :  { %v818_v61 = vadd.f32 %v817_v54, %v720_v51 }
 0x216   :  { %v1529_v56 = vpop.f32.mrf.mxu0 }
 0x217   :  { %v829_v62 = vadd.f32 %v1529_v56, %v1509_v53 }
 0x218   :  { %v820_v59 = vpop.f32.mrf.mxu0 }
 0x219   :  { %v821_v3 = vadd.f32 %v820_v59, %v723_v55  ;;  %v1810_v55 = vmov 1966171168  }
 0x21a   :  { %v1217_v56 = vunpack.c.l.s4 %v1810_v55 }
 0x22e   :  { %v1548_v57 = vpop.f32.mrf.mxu1 }
 0x22f   :  { %v948_v63 = vadd.f32 %v1548_v57, %v826_v58  ;;  %v1218_v57 = vunpack.c.0.s8 %v1217_v56 }
 0x230   :  { %v931_v60 = vpop.f32.mrf.mxu1 }
 0x231   :  { %v946_v4 = vadd.f32 %v931_v60, %v818_v61  ;;  %v2010_v8 = vadd.f32 %v1332_v1, %v948_v63  ;;  %v1221_v58 = vsub.s32 %v1218_v57, %v1892_v7  ;;  %v1240_v61 = vsub.s32 0, %v1892_v7 }
 0x232   :  { %v1549_v2 = vpop.f32.mrf.mxu1 }
 0x233   :  { %v949_v5 = vadd.f32 %v1549_v2, %v829_v62  ;;  %v957_v11 = vadd.f32 %v1332_v1, %v946_v4 }
 0x234   :  { %v934_v6 = vpop.f32.mrf.mxu1 }
 0x235   :  { %v2012_v9 = vadd.f32 %v1332_v1, %v949_v5  ;;  %v947_v10 = vadd.f32 %v934_v6, %v821_v3 }
 0x237   :  { %v968_v12 = vadd.f32 %v2012_v9, %v2010_v8  ;;  %v958_v13 = vadd.f32 %v1332_v1, %v947_v10 }
 0x239   :  { %v969_v14 = vrot.slane %v968_v12, 4  ;;  %v961_v15 = vadd.f32 %v958_v13, %v957_v11 }
 0x23b   :  { %v970_v16 = vadd.f32 %v969_v14, %v968_v12  ;;  %v962_v28 = vrot.slane %v961_v15, 4 }
 0x23d   :  { %v971_v17 = vrot.slane %v970_v16, 2  ;;  %v963_v18 = vadd.f32 %v962_v28, %v961_v15 }
 0x23f   :  { %v972_v22 = vadd.f32 %v971_v17, %v970_v16  ;;  %v964_v23 = vrot.slane %v963_v18, 2 }
 0x241   :  { %v973_v24 = vrot.slane %v972_v22, 1  ;;  %v965_v40 = vadd.f32 %v964_v23, %v963_v18 }
 0x243   :  { %v974_v43 = vadd.f32 %v973_v24, %v972_v22  ;;  %v966_v26 = vrot.slane %v965_v40, 1 }
 0x245   :  { %v976_v29 = vpack.c.bf16 %v974_v43, %v974_v43  ;;  %v967_v30 = vadd.f32 %v966_v26, %v965_v40 }
 0x247   :  { %v975_v31 = vpack.c.bf16 %v967_v30, %v967_v30  ;;  %v1003_v32 = vunpack.c.l.b16 %v976_v29 }
 0x249   :  { %v1002_v33 = vunpack.c.l.b16 %v975_v31 }
 0x24b   :  { %v1005_v34 = vsel %vm1004_vm7, %v1003_v32, %v1002_v33 }
 0x24c   :  { %v1006_v35 = vpack.c.b16 %v1005_v34, %v1005_v34 }
 0x24e   :  { %1567 = vmatmul.mubr.bf16.vlgmr.msra.gmra.mxu0 %v1006_v35 }
 0x30e   :  { %v1090_v38 = vpop.f32.mrf.mxu0 }
 0x30f   :  { %v1091_v39 = vadd.f32 %v1333_v0, %v1090_v38 }
 0x310   :  { %v1568_v41 = vpop.f32.mrf.mxu0 }
 0x311   :  { %v1096_v42 = vmax.f32 %v1091_v39, 0.0 }
 0x312   :  { %v1093_v44 = vpop.f32.mrf.mxu0 }
 0x313   :  { %v1097_v45 = vpack.c.bf16 %v1096_v42, %v1096_v42 }
 0x314   :  { %v1569_v46 = vpop.f32.mrf.mxu0 }
 0x315   :  { %1587 = vmatmul.mubr.bf16.vlgmr.msra.gmra.mxu1 %v1097_v45 }
 0x3d5   :  { %v1203_v48 = vpop.f32.mrf.mxu1 }
 0x3d6   :  { %v1204_v27 = vadd.f32 %v1342_v47, %v1203_v48 }
 0x3d7   :  { %v1588_v49 = vpop.f32.mrf.mxu1 }
 0x3d8   :  { %v1351_v50 = vmul.f32 -1.442695, %v1204_v27 }
 0x3d9   :  { %v1206_v51 = vpop.f32.mrf.mxu1 }
 0x3da   :  { %1667 = vpow2.f32 %v1351_v50 }
 0x3db   :  { %v1589_v52 = vpop.f32.mrf.mxu1 }
 0x3e7   :  { %v1668_v53 = vpop.eup %1667 }
 0x3e8   :  { %v1212_v54 = vadd.f32 1.0, %v1668_v53 }
 0x3ea   :  { %1669 = vrcp.f32 %v1212_v54 }
 0x3f7   :  { %v1670_v59 = vpop.eup %1669 }
 0x3f8   :  { %v1222_v60 = vrot.slane %v1670_v59, %v1221_v58 }
 0x3fa   :  { %v1223_v62 = vcombine.high %v1222_v60, %v1222_v60  ;;  %v1230_v63 = vrot.slane %v1222_v60, %v1221_v58 }
 0x3fc   :  { %v1237_v1 = vrot.slane %v1223_v62, %v1221_v58  ;;  %v1241_v2 = vrot.slane %v1230_v63, %v1240_v61 }
 0x3fe   :  { %v1245_v3 = vrot.slane %v1237_v1, %v1240_v61  ;;  %v1248_v4 = vmul.f32 %v1241_v2, %v957_v11  ;;  %v1249_v5 = vmul.f32 %v1241_v2, %v958_v13 }
 0x400   :  { %v1250_v6 = vmul.f32 %v1245_v3, %v2010_v8  ;;  %v1251_v10 = vmul.f32 %v1245_v3, %v2012_v9  ;;  %v1252_v12 = vadd.f32 %v1248_v4, %v1901_v19  ;;  %v1253_v14 = vadd.f32 %v1249_v5, %v1903_v20 }
 0x402   :  { %v1254_v15 = vadd.f32 %v1250_v6, %v1911_v25  ;;  %v1255_v7 = vadd.f32 %v1251_v10, %v1905_v21  ;;  %1256 = vst [vmem:[#allocation11] sm:$0xff] %v1252_v12  ;;  %1257 = vst [vmem:[#allocation11 + $0x8] sm:$0xff] %v1253_v14 }
 0x404   :  { %1258 = vst [vmem:[#allocation11 + $0x10] sm:$0xff] %v1254_v15  ;;  %1259 = vst [vmem:[#allocation11 + $0x18] sm:$0xff] %v1255_v7 }
 0x405   :  { %1782 = shalt.err (!%p1779_p1)
}
 0x406   :  { %1271 = dma.vmem_to_hbm [thread:$0]  %s1266_s8, 512, %s2046_s9, [#allocation4], %s1804_s23, %s1804_s23, %s1805_s24  }
 0x407   :  { %1797 = dma.done.wait [#allocation4], 512  }
 0x408   :  { %1798 = vsyncadd [#allocation4], 4294966784 }
 0x409   :  { %1275 = vsyncpa [#allocation3], 1 }
 0x40a   :  { %1276 = vsyncpa [#allocation6], 1 }
 0x40b   :  { %1277 = vsyncpa [#allocation9], 1 }
 0x40c   :  { %1278 = vsyncpa [#allocation4], 1 }

// kernel: tpu_custom_call.1
= control target key start
LH: loop header
LB: loop body
LE: loop exit
PB: predicated region body
PF: predicated region fallthrough
CT: control target
= control target key end

     0   :  { %14 = vsyncpa [#allocation3], 0  ;;  %s2037_s0 = inlined_call_operand.hbm [shape: f32[32,128], index: 0, kind: input, shape index: {}]   ;;  %s2038_s1 = inlined_call_operand.hbm [shape: bf16[3,128,128], index: 1, kind: input, shape index: {}]   ;;  %s2039_s2 = inlined_call_operand.vmem [shape: f32[1,128], index: 2, kind: input, shape index: {}]   ;;  %s2040_s3 = inlined_call_operand.hbm [shape: bf16[3,128,128], index: 3, kind: input, shape index: {}]   ;;  %s2041_s4 = inlined_call_operand.vmem [shape: f32[1,128], index: 4, kind: input, shape index: {}]   ;;  %s2042_s5 = inlined_call_operand.hbm [shape: bf16[128,128], index: 5, kind: input, shape index: {}]   ;;  %s2043_s6 = inlined_call_operand.vmem [shape: f32[1,128], index: 6, kind: input, shape index: {}]   ;;  %s2044_s7 = inlined_call_operand.hbm [shape: bf16[128,128], index: 7, kind: input, shape index: {}]   ;;  %s2045_s8 = inlined_call_operand.vmem [shape: f32[1,128], index: 8, kind: input, shape index: {}]   ;;  %s2046_s9 = inlined_call_operand.hbm [shape: f32[32,128], index: 9, kind: output, shape index: {}]  }
   0x1   :  { %15 = vsyncpa [#allocation6], 0 }
   0x2   :  { %16 = vsyncpa [#allocation9], 0 }
   0x3   :  { %17 = vsyncpa [#allocation4], 0  ;;  %s1799_s30 = smov [#allocation5]  }
   0x4   :  { %s35_s10 = sshll.u32 %s1799_s30, 4  ;;  %s36_s10 = int_to_ptr.vmem [resolvable:$true] %s35_s10 }
   0x5   :  { %s1679_s11 = scalar_lea.vmem %s36_s10, 3072  ;;  %p1684_p1 = scmp.lt.s32.totalorder %s36_s10, %s36_s10 }
   0x6   :  { %p1680_p0 = scmp.ne.s32.totalorder %s36_s10, %s1679_s11  ;;  %p1685_p2 = scmp.lt.s32.totalorder %s1679_s11, %s1679_s11 }
   0x8   :  { %p1686_p3 = por %p1685_p2, %p1684_p1 }
   0xa   :  { %p1687_p4 = pnand %p1686_p3, %p1680_p0 }
   0xc   :  { %1690 = shalt.err (!%p1687_p4)
}
   0xd   :  { %s1800_s12 = smov 64   ;;  %s1801_s13 = smov 4  }
   0xe   :  { %41 = dma.hbm_to_vmem [thread:$0]  %s2038_s1, 3072, %s36_s10, [#allocation6], %s1800_s12, %s1800_s12, %s1801_s13  }
   0xf   :  { %s1802_s16 = smov [#allocation8]   ;;  %s1803_s18 = smov [#allocation2]  }
  0x10   :  { %s63_s17 = sshll.u32 %s1802_s16, 4  ;;  %s23_s19 = sshll.u32 %s1803_s18, 4  ;;  %s64_s17 = int_to_ptr.vmem [resolvable:$true] %s63_s17  ;;  %s24_s19 = int_to_ptr.vmem [resolvable:$true] %s23_s19 }
  0x11   :  { %s1699_s20 = scalar_lea.vmem %s64_s17, 1024  ;;  %p1704_p6 = scmp.lt.s32.totalorder %s64_s17, %s64_s17 }
  0x12   :  { %p1700_p5 = scmp.ne.s32.totalorder %s64_s17, %s1699_s20  ;;  %p1705_p7 = scmp.lt.s32.totalorder %s1699_s20, %s1699_s20 }
  0x14   :  { %p1706_p8 = por %p1705_p7, %p1704_p6 }
  0x16   :  { %p1707_p9 = pnand %p1706_p8, %p1700_p5 }
  0x18   :  { %1710 = shalt.err (!%p1707_p9)
}
  0x19   :  { %69 = dma.hbm_to_vmem [thread:$0]  %s2042_s5, 1024, %s64_s17, [#allocation9], %s1800_s12, %s1800_s12, %s1801_s13  }
  0x1a   :  { %s1719_s1 = scalar_lea.vmem %s24_s19, 512  ;;  %p1724_p11 = scmp.lt.s32.totalorder %s24_s19, %s24_s19 }
  0x1b   :  { %p1720_p10 = scmp.ne.s32.totalorder %s24_s19, %s1719_s1  ;;  %p1725_p12 = scmp.lt.s32.totalorder %s1719_s1, %s1719_s1 }
  0x1d   :  { %p1726_p13 = por %p1725_p12, %p1724_p11 }
  0x1f   :  { %p1727_p0 = pnand %p1726_p13, %p1720_p10 }
  0x21   :  { %1730 = shalt.err (!%p1727_p0)
}
  0x22   :  { %s1804_s23 = smov 128   ;;  %s1805_s24 = smov 8  }
  0x23   :  { %29 = dma.hbm_to_vmem [thread:$0]  %s2037_s0, 512, %s24_s19, [#allocation3], %s1804_s23, %s1804_s23, %s1805_s24  }
  0x24   :  { %s1806_s27 = smov [#allocation7]   ;;  %s1807_s5 = smov [#allocation10]  }
  0x25   :  { %s49_s28 = sshll.u32 %s1806_s27, 4  ;;  %s77_s29 = sshll.u32 %s1807_s5, 4  ;;  %s50_s28 = int_to_ptr.vmem [resolvable:$true] %s49_s28  ;;  %s78_s29 = int_to_ptr.vmem [resolvable:$true] %s77_s29 }
  0x26   :  { %s1739_s30 = scalar_lea.vmem %s50_s28, 3072  ;;  %p1744_p2 = scmp.lt.s32.totalorder %s50_s28, %s50_s28 }
  0x27   :  { %p1740_p1 = scmp.ne.s32.totalorder %s50_s28, %s1739_s30  ;;  %p1745_p3 = scmp.lt.s32.totalorder %s1739_s30, %s1739_s30 }
  0x29   :  { %p1746_p4 = por %p1745_p3, %p1744_p2 }
  0x2b   :  { %p1747_p5 = pnand %p1746_p4, %p1740_p1 }
  0x2d   :  { %1750 = shalt.err (!%p1747_p5)
}
  0x2e   :  { %55 = dma.hbm_to_vmem [thread:$0]  %s2040_s3, 3072, %s50_s28, [#allocation6], %s1800_s12, %s1800_s12, %s1801_s13  }
  0x2f   :  { %s1759_s0 = scalar_lea.vmem %s78_s29, 1024  ;;  %p1764_p7 = scmp.lt.s32.totalorder %s78_s29, %s78_s29 }
  0x30   :  { %p1760_p6 = scmp.ne.s32.totalorder %s78_s29, %s1759_s0  ;;  %p1765_p8 = scmp.lt.s32.totalorder %s1759_s0, %s1759_s0 }
  0x32   :  { %p1766_p9 = por %p1765_p8, %p1764_p7 }
  0x34   :  { %p1767_p10 = pnand %p1766_p9, %p1760_p6 }
  0x36   :  { %1770 = shalt.err (!%p1767_p10)
}
  0x37   :  { %83 = dma.hbm_to_vmem [thread:$0]  %s2044_s7, 1024, %s78_s29, [#allocation9], %s1800_s12, %s1800_s12, %s1801_s13  }
  0x38   :  { %1791 = dma.done.wait [#allocation3], 512  }
  0x39   :  { %1792 = vsyncadd [#allocation3], 4294966784 }
  0x3a   :  { %1793 = dma.done.wait [#allocation6], 6144  }
  0x3b   :  { %1794 = vsyncadd [#allocation6], 4294961152 }
  0x3c   :  { %1795 = dma.done.wait [#allocation9], 2048  }
  0x3d   :  { %1796 = vsyncadd [#allocation9], 4294965248  ;;  %v1603_v0 = vld [vmem:[#allocation5 + $0x78] sm:$0xff]   ;;  %v1605_v2 = vld [vmem:[#allocation5 + $0x70] sm:$0xff]   ;;  %v106_v3 = vlaneseq  ;;  %v1808_v27 = vmov 0.0   ;;  %vm1809_vm6 = vmmov 0  }
  0x3e   :  { %v1604_v1 = vld [vmem:[#allocation5 + $0x38] sm:$0xff]   ;;  %1430 = vmatprep.subr.bf16.mxu0 %v1603_v0  ;;  %v1606_v4 = vld [vmem:[#allocation5 + $0x30] sm:$0xff]   ;;  %v1607_v5 = vld [vmem:[#allocation5 + $0x68] sm:$0xff]   ;;  %vm1004_vm7 = vcmask 1041409  }
  0x3f   :  { %1450 = vmatprep.subr.bf16.mxu1 %v1604_v1  ;;  %1431 = vmatpush3.bf16.msra.mxu0 %v1603_v0  ;;  %v1608_v6 = vld [vmem:[#allocation5 + $0x28] sm:$0xff]   ;;  %v1892_v7 = vshrl.u32 %v106_v3, 7  ;;  %v1609_v8 = vld [vmem:[#allocation5 + $0x60] sm:$0xff]   ;;  %v1611_v13 = vld [vmem:[#allocation5 + $0x58] sm:$0xff]  }
  0x40   :  { %1451 = vmatpush3.bf16.msra.mxu1 %v1604_v1  ;;  %1432 = vmatprep.subr.bf16.mxu0 %v1605_v2  ;;  %v1610_v9 = vld [vmem:[#allocation5 + $0x20] sm:$0xff]   ;;  %v1612_v14 = vld [vmem:[#allocation5 + $0x18] sm:$0xff]   ;;  %v1613_v17 = vld [vmem:[#allocation5 + $0x50] sm:$0xff]  }
  0x41   :  { %1452 = vmatprep.subr.bf16.mxu1 %v1606_v4  ;;  %v115_v10 = vand.u32 15, %v1892_v7  ;;  %v109_v11 = vadd.s32 16, %v1892_v7  ;;  %v108_v12 = vadd.s32 8, %v1892_v7  ;;  %v1901_v19 = vld [vmem:[#allocation2] sm:$0xff]  ;;  %v1903_v20 = vld [vmem:[#allocation2 + $0x8] sm:$0xff]  ;;  %v1905_v21 = vld [vmem:[#allocation2 + $0x18] sm:$0xff] }
  0x42   :  { %vm187_vm1 = vcmp.lt.s32.totalorder %v1892_v7, 1  ;;  %v1614_v22 = vld [vmem:[#allocation5 + $0x10] sm:$0xff]   ;;  %v229_v23 = vpack.c.bf16 %v1903_v20, %v1901_v19  ;;  %v183_v24 = vrot.slane %v1901_v19, 7  ;;  %v1914_v26 = vadd.s32 24, %v1892_v7  ;;  %v1615_v31 = vld [vmem:[#allocation5 + $0x48] sm:$0xff]   ;;  %v1617_v41 = vld [vmem:[#allocation5 + $0x40] sm:$0xff]  }
  0x43   :  { %1433 = vmatpush3.bf16.msra.mxu0 %v1605_v2  ;;  %vm1897_vm0 = vcmp.ne.s32.totalorder %v115_v10, 0  ;;  %v129_v16 = vand.u32 15, %v109_v11  ;;  %v122_v18 = vand.u32 15, %v108_v12  ;;  %v1911_v25 = vld [vmem:[#allocation2 + $0x10] sm:$0xff]  ;;  %v184_v29 = vrot.slane %v1903_v20, 7  ;;  %v1616_v33 = vld [vmem:[#allocation5 + $0x8] sm:$0xff]  }
  0x44   :  { %1453 = vmatpush3.bf16.msra.mxu1 %v1606_v4  ;;  %1434 = vmatprep.subr.bf16.mxu0 %v1607_v5  ;;  %v1919_v28 = vsel %vm1897_vm0, 1.0, %v1808_v27  ;;  %v186_v30 = vrot.slane %v1905_v21, 7  ;;  %v185_v36 = vrot.slane %v1911_v25, 7  ;;  %v199_v37 = vrot.slane %v1903_v20, 1  ;;  %v1618_v44 = vld [vmem:[#allocation5] sm:$0xff]   ;;  %v1619_v50 = vld [vmem:[#allocation5 + $0xb8] sm:$0xff]  }
  0x45   :  { %1454 = vmatprep.subr.bf16.mxu1 %v1608_v6  ;;  %vm161_vm2 = vcmp.ne.s32.totalorder %v129_v16, 0  ;;  %1446 = vmatprep.mubr.bf16.mxu0 %v229_v23  ;;  %vm1923_vm3 = vcmp.ne.s32.totalorder %v122_v18, 15  ;;  %v190_v34 = vsel %vm187_vm1, %v183_v24, %v184_v29  ;;  %v200_v39 = vrot.slane %v1911_v25, 1  ;;  %v1620_v56 = vld [vmem:[#allocation5 + $0xb0] sm:$0xff]   ;;  %v1621_v59 = vld [vmem:[#allocation5 + $0xa8] sm:$0xff]   ;;  %v1622_v60 = vld [vmem:[#allocation5 + $0xa0] sm:$0xff]  }
  0x46   :  { %v191_v35 = vsel %vm187_vm1, %v186_v30, %v183_v24  ;;  %v1936_v40 = vsel %vm161_vm2, 1.0, %v1808_v27  ;;  %vm202_vm4 = vcmp.lt.s32.totalorder %v1892_v7, 7  ;;  %v1942_v43 = vsel %vm1923_vm3, 1.0, %v1808_v27  ;;  %v1623_v61 = vld [vmem:[#allocation5 + $0x98] sm:$0xff]   ;;  %v1624_v62 = vld [vmem:[#allocation5 + $0x90] sm:$0xff]   ;;  %v1625_v63 = vld [vmem:[#allocation5 + $0x88] sm:$0xff]  }
  0x47   :  { %1435 = vmatpush3.bf16.msra.mxu0 %v1607_v5  ;;  %v192_v38 = vmul.f32 %v1919_v28, %v191_v35  ;;  %v189_v45 = vsel %vm187_vm1, %v184_v29, %v185_v36  ;;  %v136_v46 = vand.u32 15, %v1914_v26  ;;  %v198_v47 = vrot.slane %v1901_v19, 1  ;;  %v1626_v2 = vld [vmem:[#allocation5 + $0x80] sm:$0xff]   ;;  %v1631_v10 = vld [vmem:[#allocation7 + $0x30] sm:$0xff]   ;;  %v1630_v11 = vld [vmem:[#allocation7 + $0x68] sm:$0xff]  }
  0x48   :  { %1455 = vmatpush3.bf16.msra.mxu1 %v1608_v6  ;;  %1436 = vmatprep.subr.bf16.mxu0 %v1609_v8  ;;  %v204_v48 = vsel %vm202_vm4, %v199_v37, %v200_v39  ;;  %v201_v49 = vrot.slane %v1905_v21, 1  ;;  %v194_v51 = vmul.f32 %v1936_v40, %v189_v45  ;;  %v188_v52 = vsel %vm187_vm1, %v185_v36, %v186_v30  ;;  %v1627_v6 = vld [vmem:[#allocation7 + $0x78] sm:$0xff]   ;;  %v1633_v12 = vld [vmem:[#allocation7 + $0x28] sm:$0xff]   ;;  %v1635_v15 = vld [vmem:[#allocation7 + $0x20] sm:$0xff]  }
  0x49   :  { %1456 = vmatprep.subr.bf16.mxu1 %v1610_v9  ;;  %v196_v42 = vpack.c.bf16 %v190_v34, %v192_v38  ;;  %v208_v53 = vmul.f32 %v1942_v43, %v204_v48  ;;  %v205_v54 = vsel %vm202_vm4, %v198_v47, %v199_v37  ;;  %v230_v55 = vpack.c.bf16 %v1905_v21, %v1911_v25  ;;  %v1636_v16 = vld [vmem:[#allocation7 + $0x50] sm:$0xff]   ;;  %v1638_v18 = vld [vmem:[#allocation7 + $0x48] sm:$0xff]   ;;  %v1640_v23 = vld [vmem:[#allocation7 + $0x40] sm:$0xff]  }
  0x4a   :  { %v197_v57 = vpack.c.bf16 %v188_v52, %v194_v51  ;;  %vm174_vm5 = vcmp.ne.s32.totalorder %v136_v46, 15  ;;  %v206_v1 = vsel %vm202_vm4, %v201_v49, %v198_v47  ;;  %v203_v4 = vsel %vm202_vm4, %v200_v39, %v201_v49  ;;  %v1641_v24 = vld [vmem:[#allocation7 + $0x8] sm:$0xff]   ;;  %v1642_v26 = vld [vmem:[#allocation7 + $0xb8] sm:$0xff]   ;;  %v1643_v29 = vld [vmem:[#allocation7] sm:$0xff]  }
  0x4b   :  { %1437 = vmatpush3.bf16.msra.mxu0 %v1609_v8  ;;  %1466 = vmatprep.mubr.bf16.mxu1 %v196_v42  ;;  %v211_v58 = vpack.c.bf16 %v208_v53, %v205_v54  ;;  %v1960_v0 = vsel %vm174_vm5, 1.0, %v1808_v27  ;;  %v1628_v8 = vld [vmem:[#allocation7 + $0x70] sm:$0xff]   ;;  %v1307_v42 = vld [vmem:[%s2039_s2] ss:$0 sm:$0xff] }
  0x4c   :  { %1457 = vmatpush3.bf16.msra.mxu1 %v1610_v9  ;;  %1438 = vmatprep.subr.bf16.mxu0 %v1611_v13  ;;  %v210_v3 = vmul.f32 %v1960_v0, %v206_v1  ;;  %v1629_v9 = vld [vmem:[#allocation7 + $0x38] sm:$0xff]  }
  0x4d   :  { %1458 = vmatprep.subr.bf16.mxu1 %v1612_v14 }
  0x4e   :  { %v212_v5 = vpack.c.bf16 %v210_v3, %v203_v4 }
  0x4f   :  { %1439 = vmatpush3.bf16.msra.mxu0 %v1611_v13  ;;  %v1632_v13 = vld [vmem:[#allocation7 + $0x60] sm:$0xff]  }
  0x50   :  { %1459 = vmatpush3.bf16.msra.mxu1 %v1612_v14  ;;  %1440 = vmatprep.subr.bf16.mxu0 %v1613_v17  ;;  %v1634_v14 = vld [vmem:[#allocation7 + $0x58] sm:$0xff]  }
  0x51   :  { %1460 = vmatprep.subr.bf16.mxu1 %v1614_v22 }
  0x53   :  { %1441 = vmatpush3.bf16.msra.mxu0 %v1613_v17  ;;  %v1637_v17 = vld [vmem:[#allocation7 + $0x18] sm:$0xff]  }
  0x54   :  { %1461 = vmatpush3.bf16.msra.mxu1 %v1614_v22  ;;  %1442 = vmatprep.subr.bf16.mxu0 %v1615_v31  ;;  %v1639_v22 = vld [vmem:[#allocation7 + $0x10] sm:$0xff]  }
  0x55   :  { %1462 = vmatprep.subr.bf16.mxu1 %v1616_v33 }
  0x57   :  { %1443 = vmatpush3.bf16.msra.mxu0 %v1615_v31 }
  0x58   :  { %1463 = vmatpush3.bf16.msra.mxu1 %v1616_v33  ;;  %1444 = vmatprep.subr.bf16.mxu0 %v1617_v41 }
  0x59   :  { %1464 = vmatprep.subr.bf16.mxu1 %v1618_v44 }
  0x5b   :  { %1445 = vmatpush3.bf16.msra.mxu0 %v1617_v41 }
  0x5c   :  { %1465 = vmatpush3.bf16.msra.mxu1 %v1618_v44  ;;  %1470 = vmatprep.subr.bf16.mxu0 %v1619_v50 }
  0x5d   :  { %1490 = vmatprep.subr.bf16.mxu1 %v1627_v6 }
  0x5e   :  { %1447 = vmatmul.mubr.bf16.vlgmr.msra.gmra.mxu0 %v230_v55 }
  0x5f   :  { %1467 = vmatmul.mubr.bf16.vlgmr.msra.gmra.mxu1 %v197_v57  ;;  %1471 = vmatpush3.bf16.msra.mxu0 %v1619_v50 }
  0x60   :  { %1472 = vmatprep.subr.bf16.mxu0 %v1620_v56  ;;  %1486 = vmatprep.mubr.bf16.mxu0 %v211_v58 }
  0x61   :  { %1491 = vmatpush3.bf16.msra.mxu1 %v1627_v6 }
  0x62   :  { %1492 = vmatprep.subr.bf16.mxu1 %v1628_v8 }
  0x63   :  { %1473 = vmatpush3.bf16.msra.mxu0 %v1620_v56 }
  0x64   :  { %1474 = vmatprep.subr.bf16.mxu0 %v1621_v59 }
  0x65   :  { %1493 = vmatpush3.bf16.msra.mxu1 %v1628_v8 }
  0x66   :  { %1494 = vmatprep.subr.bf16.mxu1 %v1630_v11 }
  0x67   :  { %1475 = vmatpush3.bf16.msra.mxu0 %v1621_v59 }
  0x68   :  { %1476 = vmatprep.subr.bf16.mxu0 %v1622_v60 }
  0x69   :  { %1495 = vmatpush3.bf16.msra.mxu1 %v1630_v11 }
  0x6a   :  { %1496 = vmatprep.subr.bf16.mxu1 %v1632_v13 }
  0x6b   :  { %1477 = vmatpush3.bf16.msra.mxu0 %v1622_v60 }
  0x6c   :  { %1478 = vmatprep.subr.bf16.mxu0 %v1623_v61 }
  0x6d   :  { %1497 = vmatpush3.bf16.msra.mxu1 %v1632_v13 }
  0x6e   :  { %1498 = vmatprep.subr.bf16.mxu1 %v1634_v14 }
  0x6f   :  { %1479 = vmatpush3.bf16.msra.mxu0 %v1623_v61 }
  0x70   :  { %1480 = vmatprep.subr.bf16.mxu0 %v1624_v62 }
  0x71   :  { %1499 = vmatpush3.bf16.msra.mxu1 %v1634_v14 }
  0x72   :  { %1500 = vmatprep.subr.bf16.mxu1 %v1636_v16 }
  0x73   :  { %1481 = vmatpush3.bf16.msra.mxu0 %v1624_v62 }
  0x74   :  { %1482 = vmatprep.subr.bf16.mxu0 %v1625_v63 }
  0x75   :  { %1501 = vmatpush3.bf16.msra.mxu1 %v1636_v16 }
  0x76   :  { %1502 = vmatprep.subr.bf16.mxu1 %v1638_v18 }
  0x77   :  { %1483 = vmatpush3.bf16.msra.mxu0 %v1625_v63 }
  0x78   :  { %1484 = vmatprep.subr.bf16.mxu0 %v1626_v2 }
  0x79   :  { %1503 = vmatpush3.bf16.msra.mxu1 %v1638_v18 }
  0x7a   :  { %1504 = vmatprep.subr.bf16.mxu1 %v1640_v23 }
  0x7b   :  { %1485 = vmatpush3.bf16.msra.mxu0 %v1626_v2 }
  0x7c   :  { %1510 = vmatprep.subr.bf16.mxu0 %v1629_v9 }
  0x7d   :  { %1505 = vmatpush3.bf16.msra.mxu1 %v1640_v23  ;;  %v1645_v23 = vld [vmem:[#allocation7 + $0xa8] sm:$0xff]  }
  0x7e   :  { %1487 = vmatmul.mubr.bf16.vlgmr.msra.gmra.mxu0 %v212_v5  ;;  %1530 = vmatprep.subr.bf16.mxu1 %v1642_v26 }
  0x7f   :  { %1511 = vmatpush3.bf16.msra.mxu0 %v1629_v9  ;;  %v1644_v9 = vld [vmem:[#allocation7 + $0xb0] sm:$0xff]  }
  0x80   :  { %1512 = vmatprep.subr.bf16.mxu0 %v1631_v10 }
  0x83   :  { %1513 = vmatpush3.bf16.msra.mxu0 %v1631_v10 }
  0x84   :  { %1514 = vmatprep.subr.bf16.mxu0 %v1633_v12 }
  0x87   :  { %1515 = vmatpush3.bf16.msra.mxu0 %v1633_v12 }
  0x88   :  { %1516 = vmatprep.subr.bf16.mxu0 %v1635_v15 }
  0x8b   :  { %1517 = vmatpush3.bf16.msra.mxu0 %v1635_v15 }
  0x8c   :  { %1518 = vmatprep.subr.bf16.mxu0 %v1637_v17 }
  0x8f   :  { %1519 = vmatpush3.bf16.msra.mxu0 %v1637_v17 }
  0x90   :  { %1520 = vmatprep.subr.bf16.mxu0 %v1639_v22 }
  0x93   :  { %1521 = vmatpush3.bf16.msra.mxu0 %v1639_v22 }
  0x94   :  { %1522 = vmatprep.subr.bf16.mxu0 %v1641_v24 }
  0x97   :  { %1523 = vmatpush3.bf16.msra.mxu0 %v1641_v24  ;;  %v1646_v24 = vld [vmem:[#allocation7 + $0xa0] sm:$0xff]  }
  0x98   :  { %1524 = vmatprep.subr.bf16.mxu0 %v1643_v29 }
  0x9b   :  { %1525 = vmatpush3.bf16.msra.mxu0 %v1643_v29 }
  0x9c   :  { %1550 = vmatprep.subr.bf16.mxu0 %v1808_v27 }
 0x11e   :  { %v1448_v30 = vpop.f32.mrf.mxu0 }
 0x11f   :  { %v1468_v32 = vpop.f32.mrf.mxu1 }
 0x120   :  { %v330_v31 = vpop.f32.mrf.mxu0  ;;  %v436_v36 = vadd.f32 %v1468_v32, %v1448_v30  ;;  %v1650_v30 = vld [vmem:[#allocation7 + $0x80] sm:$0xff]  }
 0x121   :  { %v427_v34 = vpop.f32.mrf.mxu1 }
 0x122   :  { %v1449_v33 = vpop.f32.mrf.mxu0  ;;  %v428_v39 = vadd.f32 %v427_v34, %v330_v31 }
 0x123   :  { %v1469_v37 = vpop.f32.mrf.mxu1 }
 0x124   :  { %v333_v35 = vpop.f32.mrf.mxu0  ;;  %v439_v45 = vadd.f32 %v1469_v37, %v1449_v33  ;;  %v1653_v37 = vld [vmem:[#allocation8 + $0x28] sm:$0xff]  }
 0x125   :  { %v430_v46 = vpop.f32.mrf.mxu1 }
 0x126   :  { %v431_v52 = vadd.f32 %v430_v46, %v333_v35  ;;  %v1651_v35 = vld [vmem:[#allocation8 + $0x38] sm:$0xff]   ;;  %v1661_v46 = vld [vmem:[#allocation10 + $0x28] sm:$0xff]  }
 0x13e   :  { %v1488_v38 = vpop.f32.mrf.mxu0 }
 0x13f   :  { %v558_v41 = vadd.f32 %v1488_v38, %v436_v36  ;;  %v1652_v36 = vld [vmem:[#allocation8 + $0x30] sm:$0xff]   ;;  %v1655_v38 = vld [vmem:[#allocation8 + $0x18] sm:$0xff]  }
 0x140   :  { %v541_v44 = vpop.f32.mrf.mxu0 }
 0x141   :  { %v556_v47 = vadd.f32 %v541_v44, %v428_v39  ;;  %v569_v49 = vadd.f32 %v1307_v42, %v558_v41  ;;  %v1656_v39 = vld [vmem:[#allocation8 + $0x10] sm:$0xff]   ;;  %v1657_v41 = vld [vmem:[#allocation8 + $0x8] sm:$0xff]   ;;  %v1659_v44 = vld [vmem:[#allocation10 + $0x38] sm:$0xff]  }
 0x142   :  { %v1489_v48 = vpop.f32.mrf.mxu0 }
 0x143   :  { %v567_v50 = vadd.f32 %v1307_v42, %v556_v47  ;;  %v559_v51 = vadd.f32 %v1489_v48, %v439_v45  ;;  %v573_v57 = vmax.f32 %v569_v49, 0.0  ;;  %v1660_v45 = vld [vmem:[#allocation10 + $0x30] sm:$0xff]   ;;  %v1662_v47 = vld [vmem:[#allocation10 + $0x20] sm:$0xff]   ;;  %v1663_v48 = vld [vmem:[#allocation10 + $0x18] sm:$0xff]  }
 0x144   :  { %v544_v53 = vpop.f32.mrf.mxu0  ;;  %v1664_v49 = vld [vmem:[#allocation10 + $0x10] sm:$0xff]  }
 0x145   :  { %v571_v54 = vmax.f32 %v567_v50, 0.0  ;;  %v570_v55 = vadd.f32 %v1307_v42, %v559_v51  ;;  %v557_v56 = vadd.f32 %v544_v53, %v431_v52  ;;  %v577_v63 = vrot.slane %v573_v57, 7 }
 0x146   :  { %v591_v1 = vrot.slane %v573_v57, 1 }
 0x147   :  { %v574_v58 = vmax.f32 %v570_v55, 0.0  ;;  %v568_v59 = vadd.f32 %v1307_v42, %v557_v56  ;;  %v575_v60 = vrot.slane %v571_v54, 7  ;;  %v589_v10 = vrot.slane %v571_v54, 1  ;;  %v1658_v42 = vld [vmem:[#allocation8] sm:$0xff]  }
 0x149   :  { %v578_v61 = vrot.slane %v574_v58, 7  ;;  %v572_v62 = vmax.f32 %v568_v59, 0.0  ;;  %v620_v8 = vpack.c.bf16 %v574_v58, %v573_v57  ;;  %v592_v29 = vrot.slane %v574_v58, 1 }
 0x14b   :  { %v582_v2 = vsel %vm187_vm1, %v578_v61, %v575_v60  ;;  %v576_v3 = vrot.slane %v572_v62, 7  ;;  %v590_v4 = vrot.slane %v572_v62, 1  ;;  %v619_v5 = vpack.c.bf16 %v572_v62, %v571_v54 }
 0x14c   :  { %v583_v6 = vmul.f32 %v1919_v28, %v582_v2  ;;  %v579_v28 = vsel %vm187_vm1, %v577_v63, %v578_v61  ;;  %v596_v31 = vsel %vm202_vm4, %v592_v29, %v589_v10  ;;  %v593_v33 = vsel %vm202_vm4, %v591_v1, %v592_v29 }
 0x14d   :  { %1506 = vmatprep.mubr.bf16.mxu1 %v619_v5  ;;  %v581_v11 = vsel %vm187_vm1, %v575_v60, %v576_v3  ;;  %v580_v12 = vsel %vm187_vm1, %v576_v3, %v577_v63  ;;  %v594_v13 = vsel %vm202_vm4, %v590_v4, %v591_v1  ;;  %v595_v17 = vsel %vm202_vm4, %v589_v10, %v590_v4  ;;  %v1332_v1 = vld [vmem:[%s2041_s4] ss:$0 sm:$0xff] }
 0x14e   :  { %1507 = vmatmul.mubr.bf16.vlgmr.msra.gmra.mxu1 %v620_v8  ;;  %v587_v14 = vpack.c.bf16 %v581_v11, %v583_v6  ;;  %v585_v15 = vmul.f32 %v1936_v40, %v580_v12  ;;  %v598_v16 = vmul.f32 %v1942_v43, %v594_v13  ;;  %v1647_v40 = vld [vmem:[#allocation7 + $0x98] sm:$0xff]   ;;  %v1648_v43 = vld [vmem:[#allocation7 + $0x90] sm:$0xff]   ;;  %v600_v32 = vmul.f32 %v1960_v0, %v596_v31  ;;  %v1654_v0 = vld [vmem:[#allocation8 + $0x20] sm:$0xff]  }
 0x14f   :  { %1531 = vmatpush3.bf16.msra.mxu1 %v1642_v26  ;;  %v1649_v26 = vld [vmem:[#allocation7 + $0x88] sm:$0xff]  }
 0x150   :  { %1526 = vmatprep.mubr.bf16.mxu0 %v587_v14  ;;  %1532 = vmatprep.subr.bf16.mxu1 %v1644_v9  ;;  %v588_v18 = vpack.c.bf16 %v579_v28, %v585_v15  ;;  %v601_v22 = vpack.c.bf16 %v598_v16, %v595_v17  ;;  %v602_v34 = vpack.c.bf16 %v600_v32, %v593_v33 }
 0x152   :  { %1527 = vmatmul.mubr.bf16.vlgmr.msra.gmra.mxu0 %v588_v18  ;;  %1546 = vmatprep.mubr.bf16.mxu1 %v601_v22 }
 0x153   :  { %1533 = vmatpush3.bf16.msra.mxu1 %v1644_v9  ;;  %1551 = vmatpush3.bf16.msra.mxu0 %v1651_v35 }
 0x154   :  { %1534 = vmatprep.subr.bf16.mxu1 %v1645_v23  ;;  %1552 = vmatprep.subr.bf16.mxu0 %v1808_v27 }
 0x155   :  { %1566 = vmatprep.mubr.msk.bf16.mxu0 %vm1809_vm6, %v1808_v27 }
 0x157   :  { %1535 = vmatpush3.bf16.msra.mxu1 %v1645_v23  ;;  %1553 = vmatpush3.bf16.msra.mxu0 %v1652_v36  ;;  %v1665_v36 = vld [vmem:[#allocation10 + $0x8] sm:$0xff]  }
 0x158   :  { %1536 = vmatprep.subr.bf16.mxu1 %v1646_v24  ;;  %1554 = vmatprep.subr.bf16.mxu0 %v1808_v27 }
 0x15b   :  { %1537 = vmatpush3.bf16.msra.mxu1 %v1646_v24  ;;  %1555 = vmatpush3.bf16.msra.mxu0 %v1653_v37  ;;  %v1666_v37 = vld [vmem:[#allocation10] sm:$0xff]  }
 0x15c   :  { %1538 = vmatprep.subr.bf16.mxu1 %v1647_v40  ;;  %1556 = vmatprep.subr.bf16.mxu0 %v1808_v27 }
 0x15f   :  { %1539 = vmatpush3.bf16.msra.mxu1 %v1647_v40  ;;  %1557 = vmatpush3.bf16.msra.mxu0 %v1654_v0  ;;  %v1333_v0 = vld [vmem:[%s2043_s6] ss:$0 sm:$0xff]  ;;  %s1811_s6 = smov [#allocation11]  }
 0x160   :  { %1540 = vmatprep.subr.bf16.mxu1 %v1648_v43  ;;  %1558 = vmatprep.subr.bf16.mxu0 %v1808_v27 }
 0x163   :  { %1541 = vmatpush3.bf16.msra.mxu1 %v1648_v43  ;;  %1559 = vmatpush3.bf16.msra.mxu0 %v1655_v38 }
 0x164   :  { %1542 = vmatprep.subr.bf16.mxu1 %v1649_v26  ;;  %1560 = vmatprep.subr.bf16.mxu0 %v1808_v27 }
 0x167   :  { %1543 = vmatpush3.bf16.msra.mxu1 %v1649_v26  ;;  %1561 = vmatpush3.bf16.msra.mxu0 %v1656_v39 }
 0x168   :  { %1544 = vmatprep.subr.bf16.mxu1 %v1650_v30  ;;  %1562 = vmatprep.subr.bf16.mxu0 %v1808_v27 }
 0x16b   :  { %1545 = vmatpush3.bf16.msra.mxu1 %v1650_v30  ;;  %1563 = vmatpush3.bf16.msra.mxu0 %v1657_v41 }
 0x16c   :  { %1570 = vmatprep.subr.bf16.mxu1 %v1808_v27  ;;  %1564 = vmatprep.subr.bf16.mxu0 %v1808_v27 }
 0x16e   :  { %1547 = vmatmul.mubr.bf16.vlgmr.msra.gmra.mxu1 %v602_v34 }
 0x16f   :  { %1586 = vmatprep.mubr.msk.bf16.mxu1 %vm1809_vm6, %v1808_v27  ;;  %1565 = vmatpush3.bf16.msra.mxu0 %v1658_v42 }
 0x170   :  { %1571 = vmatpush3.bf16.msra.mxu1 %v1659_v44 }
 0x171   :  { %1572 = vmatprep.subr.bf16.mxu1 %v1808_v27 }
 0x174   :  { %1573 = vmatpush3.bf16.msra.mxu1 %v1660_v45 }
 0x175   :  { %1574 = vmatprep.subr.bf16.mxu1 %v1808_v27 }
 0x178   :  { %1575 = vmatpush3.bf16.msra.mxu1 %v1661_v46 }
 0x179   :  { %1576 = vmatprep.subr.bf16.mxu1 %v1808_v27 }
 0x17c   :  { %1577 = vmatpush3.bf16.msra.mxu1 %v1662_v47  ;;  %v1342_v47 = vld [vmem:[%s2045_s8] ss:$0 sm:$0xff]  ;;  %s1265_s8 = sshll.u32 %s1811_s6, 4  ;;  %s1266_s8 = int_to_ptr.vmem [resolvable:$true] %s1265_s8 }
 0x17d   :  { %1578 = vmatprep.subr.bf16.mxu1 %v1808_v27  ;;  %s1771_s18 = scalar_lea.vmem %s1266_s8, 512  ;;  %p1776_p12 = scmp.lt.s32.totalorder %s1266_s8, %s1266_s8 }
 0x17e   :  { %p1772_p11 = scmp.ne.s32.totalorder %s1266_s8, %s1771_s18  ;;  %p1777_p13 = scmp.lt.s32.totalorder %s1771_s18, %s1771_s18 }
 0x180   :  { %1579 = vmatpush3.bf16.msra.mxu1 %v1663_v48  ;;  %p1778_p0 = por %p1777_p13, %p1776_p12 }
 0x181   :  { %1580 = vmatprep.subr.bf16.mxu1 %v1808_v27 }
 0x182   :  { %p1779_p1 = pnand %p1778_p0, %p1772_p11 }
 0x184   :  { %1581 = vmatpush3.bf16.msra.mxu1 %v1664_v49 }
 0x185   :  { %1582 = vmatprep.subr.bf16.mxu1 %v1808_v27 }
 0x188   :  { %1583 = vmatpush3.bf16.msra.mxu1 %v1665_v36 }
 0x189   :  { %1584 = vmatprep.subr.bf16.mxu1 %v1808_v27 }
 0x18c   :  { %1585 = vmatpush3.bf16.msra.mxu1 %v1666_v37 }
 0x20e   :  { %v1508_v50 = vpop.f32.mrf.mxu1 }
 0x210   :  { %v720_v51 = vpop.f32.mrf.mxu1 }
 0x212   :  { %v1528_v52 = vpop.f32.mrf.mxu0  ;;  %v1509_v53 = vpop.f32.mrf.mxu1 }
 0x213   :  { %v826_v58 = vadd.f32 %v1528_v52, %v1508_v50 }
 0x214   :  { %v817_v54 = vpop.f32.mrf.mxu0  ;;  %v723_v55 = vpop.f32.mrf.mxu1 }
 0x215   :  { %v818_v61 = vadd.f32 %v817_v54, %v720_v51 }
 0x216   :  { %v1529_v56 = vpop.f32.mrf.mxu0 }
 0x217   :  { %v829_v62 = vadd.f32 %v1529_v56, %v1509_v53 }
 0x218   :  { %v820_v59 = vpop.f32.mrf.mxu0 }
 0x219   :  { %v821_v3 = vadd.f32 %v820_v59, %v723_v55  ;;  %v1810_v55 = vmov 1966171168  }
 0x21a   :  { %v1217_v56 = vunpack.c.l.s4 %v1810_v55 }
 0x22e   :  { %v1548_v57 = vpop.f32.mrf.mxu1 }
 0x22f   :  { %v948_v63 = vadd.f32 %v1548_v57, %v826_v58  ;;  %v1218_v57 = vunpack.c.0.s8 %v1217_v56 }
 0x230   :  { %v931_v60 = vpop.f32.mrf.mxu1 }
 0x231   :  { %v946_v4 = vadd.f32 %v931_v60, %v818_v61  ;;  %v2010_v8 = vadd.f32 %v1332_v1, %v948_v63  ;;  %v1221_v58 = vsub.s32 %v1218_v57, %v1892_v7  ;;  %v1240_v61 = vsub.s32 0, %v1892_v7 }
 0x232   :  { %v1549_v2 = vpop.f32.mrf.mxu1 }
 0x233   :  { %v949_v5 = vadd.f32 %v1549_v2, %v829_v62  ;;  %v957_v11 = vadd.f32 %v1332_v1, %v946_v4 }
 0x234   :  { %v934_v6 = vpop.f32.mrf.mxu1 }
 0x235   :  { %v2012_v9 = vadd.f32 %v1332_v1, %v949_v5  ;;  %v947_v10 = vadd.f32 %v934_v6, %v821_v3 }
 0x237   :  { %v968_v12 = vadd.f32 %v2012_v9, %v2010_v8  ;;  %v958_v13 = vadd.f32 %v1332_v1, %v947_v10 }
 0x239   :  { %v969_v14 = vrot.slane %v968_v12, 4  ;;  %v961_v15 = vadd.f32 %v958_v13, %v957_v11 }
 0x23b   :  { %v970_v16 = vadd.f32 %v969_v14, %v968_v12  ;;  %v962_v28 = vrot.slane %v961_v15, 4 }
 0x23d   :  { %v971_v17 = vrot.slane %v970_v16, 2  ;;  %v963_v18 = vadd.f32 %v962_v28, %v961_v15 }
 0x23f   :  { %v972_v22 = vadd.f32 %v971_v17, %v970_v16  ;;  %v964_v23 = vrot.slane %v963_v18, 2 }
 0x241   :  { %v973_v24 = vrot.slane %v972_v22, 1  ;;  %v965_v40 = vadd.f32 %v964_v23, %v963_v18 }
 0x243   :  { %v974_v43 = vadd.f32 %v973_v24, %v972_v22  ;;  %v966_v26 = vrot.slane %v965_v40, 1 }
 0x245   :  { %v976_v29 = vpack.c.bf16 %v974_v43, %v974_v43  ;;  %v967_v30 = vadd.f32 %v966_v26, %v965_v40 }
 0x247   :  { %v975_v31 = vpack.c.bf16 %v967_v30, %v967_v30  ;;  %v1003_v32 = vunpack.c.l.b16 %v976_v29 }
 0x249   :  { %v1002_v33 = vunpack.c.l.b16 %v975_v31 }
 0x24b   :  { %v1005_v34 = vsel %vm1004_vm7, %v1003_v32, %v1002_v33 }
 0x24c   :  { %v1006_v35 = vpack.c.b16 %v1005_v34, %v1005_v34 }
 0x24e   :  { %1567 = vmatmul.mubr.bf16.vlgmr.msra.gmra.mxu0 %v1006_v35 }
 0x30e   :  { %v1090_v38 = vpop.f32.mrf.mxu0 }
 0x30f   :  { %v1091_v39 = vadd.f32 %v1333_v0, %v1090_v38 }
 0x310   :  { %v1568_v41 = vpop.f32.mrf.mxu0 }
 0x311   :  { %v1096_v42 = vmax.f32 %v1091_v39, 0.0 }
 0x312   :  { %v1093_v44 = vpop.f32.mrf.mxu0 }
 0x313   :  { %v1097_v45 = vpack.c.bf16 %v1096_v42, %v1096_v42 }
 0x314   :  { %v1569_v46 = vpop.f32.mrf.mxu0 }
 0x315   :  { %1587 = vmatmul.mubr.bf16.vlgmr.msra.gmra.mxu1 %v1097_v45 }
 0x3d5   :  { %v1203_v48 = vpop.f32.mrf.mxu1 }
 0x3d6   :  { %v1204_v27 = vadd.f32 %v1342_v47, %v1203_v48 }
 0x3d7   :  { %v1588_v49 = vpop.f32.mrf.mxu1 }
 0x3d8   :  { %v1351_v50 = vmul.f32 -1.442695, %v1204_v27 }
 0x3d9   :  { %v1206_v51 = vpop.f32.mrf.mxu1 }
 0x3da   :  { %1667 = vpow2.f32 %v1351_v50 }
 0x3db   :  { %v1589_v52 = vpop.f32.mrf.mxu1 }
 0x3e7   :  { %v1668_v53 = vpop.eup %1667 }
 0x3e8   :  { %v1212_v54 = vadd.f32 1.0, %v1668_v53 }
 0x3ea   :  { %1669 = vrcp.f32 %v1212_v54 }
 0x3f7   :  { %v1670_v59 = vpop.eup %1669 }
 0x3f8   :  { %v1222_v60 = vrot.slane %v1670_v59, %v1221_v58 }
 0x3fa   :  { %v1223_v62 = vcombine.high %v1222_v60, %v1222_v60  ;;  %v1230_v63 = vrot.slane %v1222_v60, %v1221_v58 }
 0x3fc   :  { %v1237_v1 = vrot.slane %v1223_v62, %v1221_v58  ;;  %v1241_v2 = vrot.slane %v1230_v63, %v1240_v61 }
 0x3fe   :  { %v1245_v3 = vrot.slane %v1237_v1, %v1240_v61  ;;  %v1248_v4 = vmul.f32 %v1241_v2, %v957_v11  ;;  %v1249_v5 = vmul.f32 %v1241_v2, %v958_v13 }
 0x400   :  { %v1250_v6 = vmul.f32 %v1245_v3, %v2010_v8  ;;  %v1251_v10 = vmul.f32 %v1245_v3, %v2012_v9  ;;  %v1252_v12 = vadd.f32 %v1248_v4, %v1901_v19  ;;  %v1253_v14 = vadd.f32 %v1249_v5, %v1903_v20 }
 0x402   :  { %v1254_v15 = vadd.f32 %v1250_v6, %v1911_v25  ;;  %v1255_v7 = vadd.f32 %v1251_v10, %v1905_v21  ;;  %1256 = vst [vmem:[#allocation11] sm:$0xff] %v1252_v12  ;;  %1257 = vst [vmem:[#allocation11 + $0x8] sm:$0xff] %v1253_v14 }
 0x404   :  { %1258 = vst [vmem:[#allocation11 + $0x10] sm:$0xff] %v1254_v15  ;;  %1259 = vst [vmem:[#allocation11 + $0x18] sm:$0xff] %v1255_v7 }
 0x405   :  { %1782 = shalt.err (!%p1779_p1)
}
 0x406   :  { %1271 = dma.vmem_to_hbm [thread:$0]  %s1266_s8, 512, %s2046_s9, [#allocation4], %s1804_s23, %s1804_s23, %s1805_s24  }
 0x407   :  { %1797 = dma.done.wait [#allocation4], 512  }
 0x408   :  { %1798 = vsyncadd [#allocation4], 4294966784 }
 0x409   :  { %1275 = vsyncpa [#allocation3], 1 }
 0x40a   :  { %1276 = vsyncpa [#allocation6], 1 }
 0x40b   :  { %1277 = vsyncpa [#allocation9], 1 }
 0x40c   :  { %1278 = vsyncpa [#allocation4], 1 }

</bundles_post_ra>
